<compile_context>
chip_gen: v7x
topology: tpu7x:2x2x1
jax: 0.10.0
libtpu: 0.0.40
codegen_flags: <defaults>
</compile_context>

<pallas_src>
import jax
import jax.numpy as jnp
from jax.experimental import pallas as pl
from jax.experimental.pallas import tpu as pltpu


def _round_up(x, m):
    return ((x + m - 1) // m) * m


# ----------------------------- Pallas kernels ------------------------------

def _conv_pool_kernel(p_ref, w_ref, b_ref, o_ref):
    """Fused conv (as matmul) + bias + ReLU + 2x2/stride-2 max-pool.

    p_ref holds the im2col rows of the four pixels of every 2x2 pooling window,
    stacked along a leading tap axis: (4, tm, Kpad).  The four tap matmuls are
    executed as ONE MXU dot on the (4*tm, Kpad) stack; the max over taps is
    taken before the shared bias / ReLU epilogue, which is valid because
    relu(max_t(z_t) + b) == maxpool(relu(z + b))."""
    ntap, tm, kpad = p_ref.shape
    acc = jnp.dot(p_ref[...].reshape(ntap * tm, kpad), w_ref[...],
                  preferred_element_type=jnp.float32)
    acc = acc.reshape(ntap, tm, 128)
    mx = jnp.maximum(jnp.maximum(acc[0], acc[1]),
                     jnp.maximum(acc[2], acc[3]))
    o_ref[...] = jnp.maximum(mx + b_ref[...], 0.0).astype(o_ref.dtype)


def _mlp_kernel(x_ref, w1_ref, b1_ref, w2_ref, b2_ref, w3_ref, b3_ref, o_ref):
    """Fused fc1 -> ReLU -> fc2 -> ReLU -> fc3 (bf16 matmuls, f32 epilogues)."""
    h = jnp.dot(x_ref[...], w1_ref[...], preferred_element_type=jnp.float32)
    h = jnp.maximum(h + b1_ref[...], 0.0).astype(jnp.bfloat16)
    h = jnp.dot(h, w2_ref[...], preferred_element_type=jnp.float32)
    h = jnp.maximum(h + b2_ref[...], 0.0).astype(jnp.bfloat16)
    o_ref[...] = (jnp.dot(h, w3_ref[...], preferred_element_type=jnp.float32)
                  + b3_ref[...])


# ------------------------------ layer wrappers ------------------------------

def conv_relu_pool(x, w_pad, b_pad, oc, *, tm=512):
    """x: (B, H, W, C) NHWC (any float dtype; cast to bf16 once here).
    w_pad: (Kpad, 128) bf16 in (kh, kw, ic, oc) flatten order, zero-padded.
    b_pad: (1, 128) f32.  Returns pooled activation (B, OH//2, OW//2, oc) bf16
    (VALID 5x5 conv, stride 1, ReLU, 2x2/stride-2 max-pool)."""
    B, H, W, C = x.shape
    kh = kw = 5
    oh, ow = H - kh + 1, W - kw + 1
    assert oh % 2 == 0 and ow % 2 == 0, "fused 2x2 pool needs even conv output"
    ohh, oww = oh // 2, ow // 2
    K = kh * kw * C
    Kpad = w_pad.shape[0]
    M = B * ohh * oww

    # Tile so that there are >= 2 grid steps whenever M allows (v7x megacore),
    # capped at tm (512 default: ~85% of HBM roofline per measured data).
    tm = max(8, min(tm, _round_up(pl.cdiv(M, 2), 8)))
    Mpad = _round_up(M, tm)
    grid = Mpad // tm

    # bf16 im2col taps built directly from strided slices of x (no full f32
    # patch tensor).  Tap (di, dj) row (b, ph, pw) covers conv output pixel
    # (2*ph + di, 2*pw + dj); K ordering (i, j, c) matches the weight flatten.
    xb = x.astype(jnp.bfloat16)
    taps = []
    for di in (0, 1):
        for dj in (0, 1):
            cols = [
                xb[:, di + i: di + i + 2 * ohh - 1: 2,
                      dj + j: dj + j + 2 * oww - 1: 2, :]
                for i in range(kh) for j in range(kw)
            ]
            v = jnp.concatenate(cols, axis=-1).reshape(M, K)
            taps.append(jnp.pad(v, ((0, Mpad - M), (0, Kpad - K))))
    p = jnp.stack(taps, axis=0)                            # (4, Mpad, Kpad) bf16

    cost = pl.CostEstimate(
        flops=2 * 4 * Mpad * Kpad * 128,
        transcendentals=0,
        bytes_accessed=(4 * Mpad * Kpad * 2 + Kpad * 128 * 2
                        + 128 * 4 + Mpad * 128 * 2),
    )

    out = pl.pallas_call(
        _conv_pool_kernel,
        out_shape=jax.ShapeDtypeStruct((Mpad, 128), jnp.bfloat16),
        grid=(grid,),
        in_specs=[
            pl.BlockSpec((4, tm, Kpad), lambda i: (0, i, 0)),
            pl.BlockSpec((Kpad, 128), lambda i: (0, 0)),
            pl.BlockSpec((1, 128), lambda i: (0, 0)),
        ],
        out_specs=pl.BlockSpec((tm, 128), lambda i: (i, 0)),
        compiler_params=pltpu.CompilerParams(
            dimension_semantics=("parallel",)),
        cost_estimate=cost,
    )(p, w_pad, b_pad)

    return out[:M, :oc].reshape(B, ohh, oww, oc)


def mlp_head(x_flat, p, *, tb=256):
    """x_flat: (B, 400) (any float dtype).  Returns (B, 10) f32 via one fused
    Pallas call (fc1 K kept at its natural 400: full-dim block exemption)."""
    B, K = x_flat.shape
    Kfc1 = p["fc1_w"].shape[0]                             # 400
    assert K == Kfc1
    tb = max(8, min(tb, _round_up(pl.cdiv(B, 2), 8)))
    Bpad = _round_up(B, tb)
    x = jnp.pad(x_flat.astype(jnp.bfloat16), ((0, Bpad - B), (0, 0)))

    cost = pl.CostEstimate(
        flops=2 * Bpad * (Kfc1 * 128 + 128 * 128 + 128 * 128),
        transcendentals=0,
        bytes_accessed=(Bpad * Kfc1 * 2 + (Kfc1 * 128 + 2 * 128 * 128) * 2
                        + 3 * 128 * 4 + Bpad * 128 * 4),
    )

    out = pl.pallas_call(
        _mlp_kernel,
        out_shape=jax.ShapeDtypeStruct((Bpad, 128), jnp.float32),
        grid=(Bpad // tb,),
        in_specs=[
            pl.BlockSpec((tb, Kfc1), lambda i: (i, 0)),
            pl.BlockSpec((Kfc1, 128), lambda i: (0, 0)),
            pl.BlockSpec((1, 128), lambda i: (0, 0)),
            pl.BlockSpec((128, 128), lambda i: (0, 0)),
            pl.BlockSpec((1, 128), lambda i: (0, 0)),
            pl.BlockSpec((128, 128), lambda i: (0, 0)),
            pl.BlockSpec((1, 128), lambda i: (0, 0)),
        ],
        out_specs=pl.BlockSpec((tb, 128), lambda i: (i, 0)),
        compiler_params=pltpu.CompilerParams(
            dimension_semantics=("parallel",)),
        cost_estimate=cost,
    )(x, p["fc1_w"], p["fc1_b"], p["fc2_w"], p["fc2_b"], p["fc3_w"], p["fc3_b"])

    return out[:B, :10]


# --------------------------- parameter handling -----------------------------

def init_params(key):
    """PyTorch-style (uniform) init in PyTorch layouts."""
    ks = jax.random.split(key, 10)

    def u(k, shape, fan_in):
        bound = 1.0 / jnp.sqrt(float(fan_in))
        return jax.random.uniform(k, shape, jnp.float32, -bound, bound)

    return {
        "conv1_w": u(ks[0], (6, 3, 5, 5), 3 * 25),
        "conv1_b": u(ks[1], (6,), 3 * 25),
        "conv2_w": u(ks[2], (16, 6, 5, 5), 6 * 25),
        "conv2_b": u(ks[3], (16,), 6 * 25),
        "fc1_w":   u(ks[4], (120, 400), 400),
        "fc1_b":   u(ks[5], (120,), 400),
        "fc2_w":   u(ks[6], (84, 120), 120),
        "fc2_b":   u(ks[7], (84,), 120),
        "fc3_w":   u(ks[8], (10, 84), 84),
        "fc3_b":   u(ks[9], (10,), 84),
    }


def prep_params(params):
    """One-time layout work: (K, N) matmul layout, lane-dense N=128, K padded
    to a multiple of 128 for convs (fc1 keeps K=400 full-width), weights in
    bf16, biases in f32 (1, 128)."""
    def pad2(m, rows, cols):
        r, c = m.shape
        return jnp.pad(m, ((0, rows - r), (0, cols - c)))

    def bias(b):
        return jnp.pad(b, (0, 128 - b.shape[0])).reshape(1, 128).astype(jnp.float32)

    def conv_w(w):                                     # (OC, IC, KH, KW)
        oc, ic, kh, kw = w.shape
        m = jnp.transpose(w, (2, 3, 1, 0)).reshape(kh * kw * ic, oc)
        return pad2(m, _round_up(kh * kw * ic, 128), 128).astype(jnp.bfloat16)

    def fc_w(w, kpad):                                 # (OUT, IN) -> (IN, OUT)
        return pad2(w.T, kpad, 128).astype(jnp.bfloat16)

    return {
        "conv1_w": conv_w(params["conv1_w"]), "conv1_b": bias(params["conv1_b"]),
        "conv2_w": conv_w(params["conv2_w"]), "conv2_b": bias(params["conv2_b"]),
        "fc1_w": fc_w(params["fc1_w"], 400),  "fc1_b": bias(params["fc1_b"]),
        "fc2_w": fc_w(params["fc2_w"], 128),  "fc2_b": bias(params["fc2_b"]),
        "fc3_w": fc_w(params["fc3_w"], 128),  "fc3_b": bias(params["fc3_b"]),
    }


# ------------------------------- forward ------------------------------------

def net_forward(p, x_nchw):
    x = jnp.transpose(x_nchw, (0, 2, 3, 1))                        # NCHW -> NHWC
    x = conv_relu_pool(x, p["conv1_w"], p["conv1_b"], 6)           # (B,14,14,6) bf16
    x = conv_relu_pool(x, p["conv2_w"], p["conv2_b"], 16)          # (B, 5, 5,16) bf16
    B = x.shape[0]
    # Match PyTorch's x.view(-1, 16*5*5): flatten in NCHW (channel-major) order.
    x = jnp.transpose(x, (0, 3, 1, 2)).reshape(B, 16 * 5 * 5)
    return mlp_head(x, p)                                          # (B, 10) f32


if __name__ == "__main__":
    key = jax.random.PRNGKey(0)
    pkey, xkey = jax.random.split(key)
    params = prep_params(init_params(pkey))     # layout work hoisted out of fwd
    # The module's forward implies 3x32x32 spatial input (16*5*5 flatten).
    x = jax.random.normal(xkey, (2, 3, 32, 32), dtype=jnp.float32)

    out = jax.jit(net_forward)(params, x)
    out = jax.block_until_ready(out)
    assert out.shape == (2, 10), out.shape
    assert out.dtype == jnp.float32
    print("KERNEL_OK")
</pallas_src>

<mosaic_0001>
module attributes {stable_mosaic.version = 11 : i64} {
  func.func @_conv_pool_kernel(%arg0: i32, %arg1: memref<4x200x128xbf16, #tpu.memory_space<vmem>>, %arg2: memref<128x128xbf16, #tpu.memory_space<vmem>>, %arg3: memref<1x128xf32, #tpu.memory_space<vmem>>, %arg4: memref<200x128xbf16, #tpu.memory_space<vmem>>) attributes {dimension_semantics = [#tpu.dimension_semantics<parallel>], iteration_bounds = array<i64: 2>, scalar_prefetch = 0 : i64, scratch_operands = 0 : i64, tpu.core_type = #tpu.core_type<tc>, window_params = [{transform_indices = @transform_0, window_bounds = array<i64: 4, 200, 128>}, {pipeline_mode = #tpu.pipeline_mode<synchronous>, transform_indices = @transform_1, window_bounds = array<i64: 128, 128>}, {pipeline_mode = #tpu.pipeline_mode<synchronous>, transform_indices = @transform_2, window_bounds = array<i64: 1, 128>}, {transform_indices = @transform_3, window_bounds = array<i64: 200, 128>}]} {
    %c0 = arith.constant 0 : index
    %c0_0 = arith.constant 0 : index
    %c0_1 = arith.constant 0 : index
    %0 = vector.load %arg1[%c0, %c0_0, %c0_1] : memref<4x200x128xbf16, #tpu.memory_space<vmem>>, vector<4x200x128xbf16>
    %1 = vector.shape_cast %0 : vector<4x200x128xbf16> to vector<800x128xbf16>
    %c0_2 = arith.constant 0 : index
    %c0_3 = arith.constant 0 : index
    %2 = vector.load %arg2[%c0_2, %c0_3] : memref<128x128xbf16, #tpu.memory_space<vmem>>, vector<128x128xbf16>
    %cst = arith.constant dense<0.000000e+00> : vector<800x128xf32>
    %3 = tpu.matmul %1, %2, %cst {dimension_numbers = #tpu.dot_dimension_numbers<[1], [0], [0], [1], [0, 0, 1, 1], [], []>} : vector<800x128xbf16>, vector<128x128xbf16>, vector<800x128xf32> -> vector<800x128xf32>
    %4 = vector.shape_cast %3 : vector<800x128xf32> to vector<4x200x128xf32>
    %5 = vector.extract_strided_slice %4 {offsets = [0, 0, 0], sizes = [1, 200, 128], strides = [1, 1, 1]} : vector<4x200x128xf32> to vector<1x200x128xf32>
    %6 = vector.shape_cast %5 : vector<1x200x128xf32> to vector<200x128xf32>
    %7 = vector.extract_strided_slice %4 {offsets = [1, 0, 0], sizes = [1, 200, 128], strides = [1, 1, 1]} : vector<4x200x128xf32> to vector<1x200x128xf32>
    %8 = vector.shape_cast %7 : vector<1x200x128xf32> to vector<200x128xf32>
    %9 = arith.maximumf %6, %8 : vector<200x128xf32>
    %10 = vector.extract_strided_slice %4 {offsets = [2, 0, 0], sizes = [1, 200, 128], strides = [1, 1, 1]} : vector<4x200x128xf32> to vector<1x200x128xf32>
    %11 = vector.shape_cast %10 : vector<1x200x128xf32> to vector<200x128xf32>
    %12 = vector.extract_strided_slice %4 {offsets = [3, 0, 0], sizes = [1, 200, 128], strides = [1, 1, 1]} : vector<4x200x128xf32> to vector<1x200x128xf32>
    %13 = vector.shape_cast %12 : vector<1x200x128xf32> to vector<200x128xf32>
    %14 = arith.maximumf %11, %13 : vector<200x128xf32>
    %15 = arith.maximumf %9, %14 : vector<200x128xf32>
    %c0_4 = arith.constant 0 : index
    %c0_5 = arith.constant 0 : index
    %16 = vector.load %arg3[%c0_4, %c0_5] : memref<1x128xf32, #tpu.memory_space<vmem>>, vector<1x128xf32>
    %17 = vector.broadcast %16 : vector<1x128xf32> to vector<200x128xf32>
    %18 = arith.addf %15, %17 : vector<200x128xf32>
    %cst_6 = arith.constant 0.000000e+00 : f32
    %19 = vector.broadcast %cst_6 : f32 to vector<200x128xf32>
    %20 = arith.maximumf %18, %19 : vector<200x128xf32>
    %21 = arith.truncf %20 : vector<200x128xf32> to vector<200x128xbf16>
    %c0_7 = arith.constant 0 : index
    %c0_8 = arith.constant 0 : index
    %22 = vector.load %arg4[%c0_7, %c0_8] : memref<200x128xbf16, #tpu.memory_space<vmem>>, vector<200x128xbf16>
    tpu.vector_store %arg4[%c0_7, %c0_8], %21 {strides = array<i32>} : memref<200x128xbf16, #tpu.memory_space<vmem>>, vector<200x128xbf16>,
    return
  }
  func.func @transform_0(%arg0: i32) -> (i32, i32, i32) {
    %c0_i32 = arith.constant 0 : i32
    %c0_i32_0 = arith.constant 0 : i32
    %c0_i32_1 = arith.constant 0 : i32
    return %c0_i32, %arg0, %c0_i32_0 : i32, i32, i32
  }
  func.func @transform_1(%arg0: i32) -> (i32, i32) {
    %c0_i32 = arith.constant 0 : i32
    %c0_i32_0 = arith.constant 0 : i32
    %c0_i32_1 = arith.constant 0 : i32
    return %c0_i32, %c0_i32_0 : i32, i32
  }
  func.func @transform_2(%arg0: i32) -> (i32, i32) {
    %c0_i32 = arith.constant 0 : i32
    %c0_i32_0 = arith.constant 0 : i32
    %c0_i32_1 = arith.constant 0 : i32
    return %c0_i32, %c0_i32_0 : i32, i32
  }
  func.func @transform_3(%arg0: i32) -> (i32, i32) {
    %c0_i32 = arith.constant 0 : i32
    %c0_i32_0 = arith.constant 0 : i32
    return %arg0, %c0_i32 : i32, i32
  }
}

module attributes {stable_mosaic.version = 11 : i64} {
  func.func @_mlp_kernel(%arg0: i32, %arg1: memref<8x400xbf16, #tpu.memory_space<vmem>>, %arg2: memref<400x128xbf16, #tpu.memory_space<vmem>>, %arg3: memref<1x128xf32, #tpu.memory_space<vmem>>, %arg4: memref<128x128xbf16, #tpu.memory_space<vmem>>, %arg5: memref<1x128xf32, #tpu.memory_space<vmem>>, %arg6: memref<128x128xbf16, #tpu.memory_space<vmem>>, %arg7: memref<1x128xf32, #tpu.memory_space<vmem>>, %arg8: memref<8x128xf32, #tpu.memory_space<vmem>>) attributes {dimension_semantics = [#tpu.dimension_semantics<parallel>], iteration_bounds = array<i64: 1>, scalar_prefetch = 0 : i64, scratch_operands = 0 : i64, tpu.core_type = #tpu.core_type<tc>, window_params = [{transform_indices = @transform_0, window_bounds = array<i64: 8, 400>}, {pipeline_mode = #tpu.pipeline_mode<synchronous>, transform_indices = @transform_1, window_bounds = array<i64: 400, 128>}, {pipeline_mode = #tpu.pipeline_mode<synchronous>, transform_indices = @transform_2, window_bounds = array<i64: 1, 128>}, {pipeline_mode = #tpu.pipeline_mode<synchronous>, transform_indices = @transform_3, window_bounds = array<i64: 128, 128>}, {pipeline_mode = #tpu.pipeline_mode<synchronous>, transform_indices = @transform_4, window_bounds = array<i64: 1, 128>}, {pipeline_mode = #tpu.pipeline_mode<synchronous>, transform_indices = @transform_5, window_bounds = array<i64: 128, 128>}, {pipeline_mode = #tpu.pipeline_mode<synchronous>, transform_indices = @transform_6, window_bounds = array<i64: 1, 128>}, {transform_indices = @transform_7, window_bounds = array<i64: 8, 128>}]} {
    %c0 = arith.constant 0 : index
    %c0_0 = arith.constant 0 : index
    %0 = vector.load %arg1[%c0, %c0_0] : memref<8x400xbf16, #tpu.memory_space<vmem>>, vector<8x400xbf16>
    %c0_1 = arith.constant 0 : index
    %c0_2 = arith.constant 0 : index
    %1 = vector.load %arg2[%c0_1, %c0_2] : memref<400x128xbf16, #tpu.memory_space<vmem>>, vector<400x128xbf16>
    %cst = arith.constant dense<0.000000e+00> : vector<8x128xf32>
    %2 = tpu.matmul %0, %1, %cst {dimension_numbers = #tpu.dot_dimension_numbers<[1], [0], [0], [1], [0, 0, 1, 1], [], []>} : vector<8x400xbf16>, vector<400x128xbf16>, vector<8x128xf32> -> vector<8x128xf32>
    %c0_3 = arith.constant 0 : index
    %c0_4 = arith.constant 0 : index
    %3 = vector.load %arg3[%c0_3, %c0_4] : memref<1x128xf32, #tpu.memory_space<vmem>>, vector<1x128xf32>
    %4 = vector.broadcast %3 : vector<1x128xf32> to vector<8x128xf32>
    %5 = arith.addf %2, %4 : vector<8x128xf32>
    %cst_5 = arith.constant 0.000000e+00 : f32
    %6 = vector.broadcast %cst_5 : f32 to vector<8x128xf32>
    %7 = arith.maximumf %5, %6 : vector<8x128xf32>
    %8 = arith.truncf %7 : vector<8x128xf32> to vector<8x128xbf16>
    %c0_6 = arith.constant 0 : index
    %c0_7 = arith.constant 0 : index
    %9 = vector.load %arg4[%c0_6, %c0_7] : memref<128x128xbf16, #tpu.memory_space<vmem>>, vector<128x128xbf16>
    %cst_8 = arith.constant dense<0.000000e+00> : vector<8x128xf32>
    %10 = tpu.matmul %8, %9, %cst_8 {dimension_numbers = #tpu.dot_dimension_numbers<[1], [0], [0], [1], [0, 0, 1, 1], [], []>} : vector<8x128xbf16>, vector<128x128xbf16>, vector<8x128xf32> -> vector<8x128xf32>
    %c0_9 = arith.constant 0 : index
    %c0_10 = arith.constant 0 : index
    %11 = vector.load %arg5[%c0_9, %c0_10] : memref<1x128xf32, #tpu.memory_space<vmem>>, vector<1x128xf32>
    %12 = vector.broadcast %11 : vector<1x128xf32> to vector<8x128xf32>
    %13 = arith.addf %10, %12 : vector<8x128xf32>
    %cst_11 = arith.constant 0.000000e+00 : f32
    %14 = vector.broadcast %cst_11 : f32 to vector<8x128xf32>
    %15 = arith.maximumf %13, %14 : vector<8x128xf32>
    %16 = arith.truncf %15 : vector<8x128xf32> to vector<8x128xbf16>
    %c0_12 = arith.constant 0 : index
    %c0_13 = arith.constant 0 : index
    %17 = vector.load %arg6[%c0_12, %c0_13] : memref<128x128xbf16, #tpu.memory_space<vmem>>, vector<128x128xbf16>
    %cst_14 = arith.constant dense<0.000000e+00> : vector<8x128xf32>
    %18 = tpu.matmul %16, %17, %cst_14 {dimension_numbers = #tpu.dot_dimension_numbers<[1], [0], [0], [1], [0, 0, 1, 1], [], []>} : vector<8x128xbf16>, vector<128x128xbf16>, vector<8x128xf32> -> vector<8x128xf32>
    %c0_15 = arith.constant 0 : index
    %c0_16 = arith.constant 0 : index
    %19 = vector.load %arg7[%c0_15, %c0_16] : memref<1x128xf32, #tpu.memory_space<vmem>>, vector<1x128xf32>
    %20 = vector.broadcast %19 : vector<1x128xf32> to vector<8x128xf32>
    %21 = arith.addf %18, %20 : vector<8x128xf32>
    %c0_17 = arith.constant 0 : index
    %c0_18 = arith.constant 0 : index
    %22 = vector.load %arg8[%c0_17, %c0_18] : memref<8x128xf32, #tpu.memory_space<vmem>>, vector<8x128xf32>
    tpu.vector_store %arg8[%c0_17, %c0_18], %21 {strides = array<i32>} : memref<8x128xf32, #tpu.memory_space<vmem>>, vector<8x128xf32>,
    return
  }
  func.func @transform_0(%arg0: i32) -> (i32, i32) {
    %c0_i32 = arith.constant 0 : i32
    %c0_i32_0 = arith.constant 0 : i32
    return %arg0, %c0_i32 : i32, i32
  }
  func.func @transform_1(%arg0: i32) -> (i32, i32) {
    %c0_i32 = arith.constant 0 : i32
    %c0_i32_0 = arith.constant 0 : i32
    %c0_i32_1 = arith.constant 0 : i32
    return %c0_i32, %c0_i32_0 : i32, i32
  }
  func.func @transform_2(%arg0: i32) -> (i32, i32) {
    %c0_i32 = arith.constant 0 : i32
    %c0_i32_0 = arith.constant 0 : i32
    %c0_i32_1 = arith.constant 0 : i32
    return %c0_i32, %c0_i32_0 : i32, i32
  }
  func.func @transform_3(%arg0: i32) -> (i32, i32) {
    %c0_i32 = arith.constant 0 : i32
    %c0_i32_0 = arith.constant 0 : i32
    %c0_i32_1 = arith.constant 0 : i32
    return %c0_i32, %c0_i32_0 : i32, i32
  }
  func.func @transform_4(%arg0: i32) -> (i32, i32) {
    %c0_i32 = arith.constant 0 : i32
    %c0_i32_0 = arith.constant 0 : i32
    %c0_i32_1 = arith.constant 0 : i32
    return %c0_i32, %c0_i32_0 : i32, i32
  }
  func.func @transform_5(%arg0: i32) -> (i32, i32) {
    %c0_i32 = arith.constant 0 : i32
    %c0_i32_0 = arith.constant 0 : i32
    %c0_i32_1 = arith.constant 0 : i32
    return %c0_i32, %c0_i32_0 : i32, i32
  }
  func.func @transform_6(%arg0: i32) -> (i32, i32) {
    %c0_i32 = arith.constant 0 : i32
    %c0_i32_0 = arith.constant 0 : i32
    %c0_i32_1 = arith.constant 0 : i32
    return %c0_i32, %c0_i32_0 : i32, i32
  }
  func.func @transform_7(%arg0: i32) -> (i32, i32) {
    %c0_i32 = arith.constant 0 : i32
    %c0_i32_0 = arith.constant 0 : i32
    return %arg0, %c0_i32 : i32, i32
  }
}

module attributes {stable_mosaic.version = 11 : i64} {
  func.func @_conv_pool_kernel(%arg0: i32, %arg1: memref<4x32x256xbf16, #tpu.memory_space<vmem>>, %arg2: memref<256x128xbf16, #tpu.memory_space<vmem>>, %arg3: memref<1x128xf32, #tpu.memory_space<vmem>>, %arg4: memref<32x128xbf16, #tpu.memory_space<vmem>>) attributes {dimension_semantics = [#tpu.dimension_semantics<parallel>], iteration_bounds = array<i64: 2>, scalar_prefetch = 0 : i64, scratch_operands = 0 : i64, tpu.core_type = #tpu.core_type<tc>, window_params = [{transform_indices = @transform_0, window_bounds = array<i64: 4, 32, 256>}, {pipeline_mode = #tpu.pipeline_mode<synchronous>, transform_indices = @transform_1, window_bounds = array<i64: 256, 128>}, {pipeline_mode = #tpu.pipeline_mode<synchronous>, transform_indices = @transform_2, window_bounds = array<i64: 1, 128>}, {transform_indices = @transform_3, window_bounds = array<i64: 32, 128>}]} {
    %c0 = arith.constant 0 : index
    %c0_0 = arith.constant 0 : index
    %c0_1 = arith.constant 0 : index
    %0 = vector.load %arg1[%c0, %c0_0, %c0_1] : memref<4x32x256xbf16, #tpu.memory_space<vmem>>, vector<4x32x256xbf16>
    %1 = vector.shape_cast %0 : vector<4x32x256xbf16> to vector<128x256xbf16>
    %c0_2 = arith.constant 0 : index
    %c0_3 = arith.constant 0 : index
    %2 = vector.load %arg2[%c0_2, %c0_3] : memref<256x128xbf16, #tpu.memory_space<vmem>>, vector<256x128xbf16>
    %cst = arith.constant dense<0.000000e+00> : vector<128x128xf32>
    %3 = tpu.matmul %1, %2, %cst {dimension_numbers = #tpu.dot_dimension_numbers<[1], [0], [0], [1], [0, 0, 1, 1], [], []>} : vector<128x256xbf16>, vector<256x128xbf16>, vector<128x128xf32> -> vector<128x128xf32>
    %4 = vector.shape_cast %3 : vector<128x128xf32> to vector<4x32x128xf32>
    %5 = vector.extract_strided_slice %4 {offsets = [0, 0, 0], sizes = [1, 32, 128], strides = [1, 1, 1]} : vector<4x32x128xf32> to vector<1x32x128xf32>
    %6 = vector.shape_cast %5 : vector<1x32x128xf32> to vector<32x128xf32>
    %7 = vector.extract_strided_slice %4 {offsets = [1, 0, 0], sizes = [1, 32, 128], strides = [1, 1, 1]} : vector<4x32x128xf32> to vector<1x32x128xf32>
    %8 = vector.shape_cast %7 : vector<1x32x128xf32> to vector<32x128xf32>
    %9 = arith.maximumf %6, %8 : vector<32x128xf32>
    %10 = vector.extract_strided_slice %4 {offsets = [2, 0, 0], sizes = [1, 32, 128], strides = [1, 1, 1]} : vector<4x32x128xf32> to vector<1x32x128xf32>
    %11 = vector.shape_cast %10 : vector<1x32x128xf32> to vector<32x128xf32>
    %12 = vector.extract_strided_slice %4 {offsets = [3, 0, 0], sizes = [1, 32, 128], strides = [1, 1, 1]} : vector<4x32x128xf32> to vector<1x32x128xf32>
    %13 = vector.shape_cast %12 : vector<1x32x128xf32> to vector<32x128xf32>
    %14 = arith.maximumf %11, %13 : vector<32x128xf32>
    %15 = arith.maximumf %9, %14 : vector<32x128xf32>
    %c0_4 = arith.constant 0 : index
    %c0_5 = arith.constant 0 : index
    %16 = vector.load %arg3[%c0_4, %c0_5] : memref<1x128xf32, #tpu.memory_space<vmem>>, vector<1x128xf32>
    %17 = vector.broadcast %16 : vector<1x128xf32> to vector<32x128xf32>
    %18 = arith.addf %15, %17 : vector<32x128xf32>
    %cst_6 = arith.constant 0.000000e+00 : f32
    %19 = vector.broadcast %cst_6 : f32 to vector<32x128xf32>
    %20 = arith.maximumf %18, %19 : vector<32x128xf32>
    %21 = arith.truncf %20 : vector<32x128xf32> to vector<32x128xbf16>
    %c0_7 = arith.constant 0 : index
    %c0_8 = arith.constant 0 : index
    %22 = vector.load %arg4[%c0_7, %c0_8] : memref<32x128xbf16, #tpu.memory_space<vmem>>, vector<32x128xbf16>
    tpu.vector_store %arg4[%c0_7, %c0_8], %21 {strides = array<i32>} : memref<32x128xbf16, #tpu.memory_space<vmem>>, vector<32x128xbf16>,
    return
  }
  func.func @transform_0(%arg0: i32) -> (i32, i32, i32) {
    %c0_i32 = arith.constant 0 : i32
    %c0_i32_0 = arith.constant 0 : i32
    %c0_i32_1 = arith.constant 0 : i32
    return %c0_i32, %arg0, %c0_i32_0 : i32, i32, i32
  }
  func.func @transform_1(%arg0: i32) -> (i32, i32) {
    %c0_i32 = arith.constant 0 : i32
    %c0_i32_0 = arith.constant 0 : i32
    %c0_i32_1 = arith.constant 0 : i32
    return %c0_i32, %c0_i32_0 : i32, i32
  }
  func.func @transform_2(%arg0: i32) -> (i32, i32) {
    %c0_i32 = arith.constant 0 : i32
    %c0_i32_0 = arith.constant 0 : i32
    %c0_i32_1 = arith.constant 0 : i32
    return %c0_i32, %c0_i32_0 : i32, i32
  }
  func.func @transform_3(%arg0: i32) -> (i32, i32) {
    %c0_i32 = arith.constant 0 : i32
    %c0_i32_0 = arith.constant 0 : i32
    return %arg0, %c0_i32 : i32, i32
  }
}

</mosaic_0001>

<bundles_post_ra>
// kernel: net_forward.3
= control target key start
LH: loop header
LB: loop body
LE: loop exit
PB: predicated region body
PF: predicated region fallthrough
CT: control target
= control target key end

     0   :  { %s2337_s12 = smov 0   ;;  %s2339_s13 = smov 0   ;;  %s2777_s0 = inlined_call_operand.vmem [shape: bf16[4,400,128], index: 0, kind: input, shape index: {}]   ;;  %s2778_s1 = inlined_call_operand.vmem [shape: bf16[128,128], index: 1, kind: input, shape index: {}]   ;;  %s2779_s2 = inlined_call_operand.vmem [shape: f32[1,128], index: 2, kind: input, shape index: {}]   ;;  %s2780_s3 = inlined_call_operand.vmem [shape: bf16[400,128], index: 3, kind: output, shape index: {}]  }
   0x1   :  { %s2341_s14 = smov 0  }
   0x2 LB: > { %s1829_s15 = sadd.s32 4294967295, %s2315_s14   ;;  %s2354_s16 = sadd.s32 1, %s2315_s14   ;;  %s2315_s14 = sphi %s2341_s14, %s2795_s14   ;;  %s2311_s13 = sphi %s2339_s13, %s2794_s13   ;;  %s2307_s12 = sphi %s2337_s12, %s2793_s12  }
   0x3   : > { %s17_s17 = ssub.s32 %s2315_s14, %s2354_s16  ;;  %s20_s18 = sadd.s32 1, %s2311_s13 }
   0x4   : > { %p18_p0 = scmp.eq.s32.totalorder %s17_s17, 0  ;;  %p27_p1 = scmp.ne.s32.totalorder %s2311_s13, %s2307_s12 }
   0x5   : > { %p28_p2 = scmp.eq.s32.totalorder %s2315_s14, 0  ;;  %p1832_p4 = scmp.ge.s32.totalorder %s2315_s14, 2 }
   0x6   : > { %s2363_s19 = scalar_select %p18_p0, %s2311_s13, %s20_s18  }
   0x7   : > { %p29_p3 = por %p28_p2, %p27_p1  ;;  %127 = sbr.rel (%p1832_p4) target bundleno = 45 (0x2d), region = 24 }
   0xe   : > { %130 = sbr.rel (!%p29_p3) target bundleno = 45 (0x2d), region = 28  ;;  %s132_s20 = sand.u32 (%p29_p3), 1, %s2311_s13  }
   0xf   : > { %s1922_s21 = smul.u32 (%p29_p3), 100, %s2315_s14 }
  0x10   : > { %s2209_s22 = smul.u32 (%p29_p3), 400, %s132_s20 }
  0x11   : > { %s2371_s25 = scalar_lea.vmem (%p29_p3), %s2777_s0, %s1922_s21 }
  0x12   : > { %v153_v0 = vld [vmem:[%s2371_s25] sm:$0xff] (%p29_p3)   ;;  %v157_v1 = vld [vmem:[%s2371_s25 + $0x8] sm:$0xff] (%p29_p3)   ;;  %v161_v2 = vld [vmem:[%s2371_s25 + $0x10] sm:$0xff] (%p29_p3)   ;;  %s2376_s26 = scalar_lea.vmem (%p29_p3), [#allocation2], %s2209_s22 }
  0x13   : > { %154 = vst [vmem:[%s2376_s26] sm:$0xff] (%p29_p3), %v153_v0   ;;  %158 = vst [vmem:[%s2376_s26 + $0x8] sm:$0xff] (%p29_p3), %v157_v1   ;;  %v165_v3 = vld [vmem:[%s2371_s25 + $0x18] sm:$0xff] (%p29_p3)   ;;  %v169_v4 = vld [vmem:[%s2371_s25 + $0x20] sm:$0xff] (%p29_p3)  }
  0x14   : > { %162 = vst [vmem:[%s2376_s26 + $0x10] sm:$0xff] (%p29_p3), %v161_v2   ;;  %v173_v5 = vld [vmem:[%s2371_s25 + $0x28] sm:$0xff] (%p29_p3)   ;;  %166 = vst [vmem:[%s2376_s26 + $0x18] sm:$0xff] (%p29_p3), %v165_v3   ;;  %v177_v6 = vld [vmem:[%s2371_s25 + $0x30] sm:$0xff] (%p29_p3)  }
  0x15   : > { %170 = vst [vmem:[%s2376_s26 + $0x20] sm:$0xff] %v169_v4   ;;  %174 = vst [vmem:[%s2376_s26 + $0x28] sm:$0xff] %v173_v5   ;;  %v181_v7 = vld [vmem:[%s2371_s25 + $0x38] sm:$0xff]   ;;  %v185_v8 = vld [vmem:[%s2371_s25 + $0x40] sm:$0xff]  }
  0x16   : > { %178 = vst [vmem:[%s2376_s26 + $0x30] sm:$0xff] %v177_v6   ;;  %182 = vst [vmem:[%s2376_s26 + $0x38] sm:$0xff] %v181_v7   ;;  %v189_v9 = vld [vmem:[%s2371_s25 + $0x48] sm:$0xff]   ;;  %v193_v10 = vld [vmem:[%s2371_s25 + $0x50] sm:$0xff]  }
  0x17   : > { %186 = vst [vmem:[%s2376_s26 + $0x40] sm:$0xff] %v185_v8   ;;  %v197_v11 = vld [vmem:[%s2371_s25 + $0x58] sm:$0xff]   ;;  %190 = vst [vmem:[%s2376_s26 + $0x48] sm:$0xff] %v189_v9   ;;  %v201_v12 = vld [vmem:[%s2371_s25 + $0x60] sm:$0xf] }
  0x18   : > { %194 = vst [vmem:[%s2376_s26 + $0x50] sm:$0xff] %v193_v10   ;;  %198 = vst [vmem:[%s2376_s26 + $0x58] sm:$0xff] %v197_v11   ;;  %v203_v13 = vld [vmem:[%s2371_s25 + $0xc8] sm:$0xff]   ;;  %v207_v14 = vld [vmem:[%s2371_s25 + $0xd0] sm:$0xff]  }
  0x19   : > { %202 = vst [vmem:[%s2376_s26 + $0x60] sm:$0xf] %v201_v12  ;;  %204 = vst [vmem:[%s2376_s26 + $0x64] sm:$0xff] %v203_v13   ;;  %v211_v15 = vld [vmem:[%s2371_s25 + $0xd8] sm:$0xff]   ;;  %v215_v16 = vld [vmem:[%s2371_s25 + $0xe0] sm:$0xff]  }
  0x1a   : > { %208 = vst [vmem:[%s2376_s26 + $0x6c] sm:$0xff] %v207_v14   ;;  %v219_v17 = vld [vmem:[%s2371_s25 + $0xe8] sm:$0xff]   ;;  %212 = vst [vmem:[%s2376_s26 + $0x74] sm:$0xff] %v211_v15   ;;  %v223_v18 = vld [vmem:[%s2371_s25 + $0xf0] sm:$0xff]  }
  0x1b   : > { %216 = vst [vmem:[%s2376_s26 + $0x7c] sm:$0xff] %v215_v16   ;;  %220 = vst [vmem:[%s2376_s26 + $0x84] sm:$0xff] %v219_v17   ;;  %v227_v19 = vld [vmem:[%s2371_s25 + $0xf8] sm:$0xff]   ;;  %v231_v20 = vld [vmem:[%s2371_s25 + $0x100] sm:$0xff]  }
  0x1c   : > { %224 = vst [vmem:[%s2376_s26 + $0x8c] sm:$0xff] %v223_v18   ;;  %228 = vst [vmem:[%s2376_s26 + $0x94] sm:$0xff] %v227_v19   ;;  %v235_v21 = vld [vmem:[%s2371_s25 + $0x108] sm:$0xff]   ;;  %v239_v22 = vld [vmem:[%s2371_s25 + $0x110] sm:$0xff]  }
  0x1d   : > { %232 = vst [vmem:[%s2376_s26 + $0x9c] sm:$0xff] %v231_v20   ;;  %v243_v23 = vld [vmem:[%s2371_s25 + $0x118] sm:$0xff]   ;;  %236 = vst [vmem:[%s2376_s26 + $0xa4] sm:$0xff] %v235_v21   ;;  %v247_v24 = vld [vmem:[%s2371_s25 + $0x120] sm:$0xff]  }
  0x1e   : > { %240 = vst [vmem:[%s2376_s26 + $0xac] sm:$0xff] %v239_v22   ;;  %244 = vst [vmem:[%s2376_s26 + $0xb4] sm:$0xff] %v243_v23   ;;  %v251_v25 = vld [vmem:[%s2371_s25 + $0x128] sm:$0xf]  ;;  %v253_v26 = vld [vmem:[%s2371_s25 + $0x190] sm:$0xff]  }
  0x1f   : > { %248 = vst [vmem:[%s2376_s26 + $0xbc] sm:$0xff] %v247_v24   ;;  %252 = vst [vmem:[%s2376_s26 + $0xc4] sm:$0xf] %v251_v25  ;;  %v257_v27 = vld [vmem:[%s2371_s25 + $0x198] sm:$0xff]   ;;  %v261_v28 = vld [vmem:[%s2371_s25 + $0x1a0] sm:$0xff]  }
  0x20   : > { %254 = vst [vmem:[%s2376_s26 + $0xc8] sm:$0xff] %v253_v26   ;;  %v265_v29 = vld [vmem:[%s2371_s25 + $0x1a8] sm:$0xff]   ;;  %258 = vst [vmem:[%s2376_s26 + $0xd0] sm:$0xff] %v257_v27   ;;  %v269_v30 = vld [vmem:[%s2371_s25 + $0x1b0] sm:$0xff]  }
  0x21   : > { %262 = vst [vmem:[%s2376_s26 + $0xd8] sm:$0xff] %v261_v28   ;;  %266 = vst [vmem:[%s2376_s26 + $0xe0] sm:$0xff] %v265_v29   ;;  %v273_v31 = vld [vmem:[%s2371_s25 + $0x1b8] sm:$0xff]   ;;  %v277_v32 = vld [vmem:[%s2371_s25 + $0x1c0] sm:$0xff]  }
  0x22   : > { %270 = vst [vmem:[%s2376_s26 + $0xe8] sm:$0xff] %v269_v30   ;;  %274 = vst [vmem:[%s2376_s26 + $0xf0] sm:$0xff] %v273_v31   ;;  %v281_v33 = vld [vmem:[%s2371_s25 + $0x1c8] sm:$0xff]   ;;  %v285_v34 = vld [vmem:[%s2371_s25 + $0x1d0] sm:$0xff]  }
  0x23   : > { %278 = vst [vmem:[%s2376_s26 + $0xf8] sm:$0xff] %v277_v32   ;;  %v289_v35 = vld [vmem:[%s2371_s25 + $0x1d8] sm:$0xff]   ;;  %282 = vst [vmem:[%s2376_s26 + $0x100] sm:$0xff] %v281_v33   ;;  %v293_v36 = vld [vmem:[%s2371_s25 + $0x1e0] sm:$0xff]  }
  0x24   : > { %286 = vst [vmem:[%s2376_s26 + $0x108] sm:$0xff] %v285_v34   ;;  %290 = vst [vmem:[%s2376_s26 + $0x110] sm:$0xff] %v289_v35   ;;  %v297_v37 = vld [vmem:[%s2371_s25 + $0x1e8] sm:$0xff]   ;;  %v301_v38 = vld [vmem:[%s2371_s25 + $0x1f0] sm:$0xf] }
  0x25   : > { %294 = vst [vmem:[%s2376_s26 + $0x118] sm:$0xff] %v293_v36   ;;  %298 = vst [vmem:[%s2376_s26 + $0x120] sm:$0xff] %v297_v37   ;;  %v303_v39 = vld [vmem:[%s2371_s25 + $0x258] sm:$0xff]   ;;  %v307_v40 = vld [vmem:[%s2371_s25 + $0x260] sm:$0xff]  }
  0x26   : > { %302 = vst [vmem:[%s2376_s26 + $0x128] sm:$0xf] %v301_v38  ;;  %v311_v41 = vld [vmem:[%s2371_s25 + $0x268] sm:$0xff]   ;;  %304 = vst [vmem:[%s2376_s26 + $0x12c] sm:$0xff] %v303_v39   ;;  %v315_v42 = vld [vmem:[%s2371_s25 + $0x270] sm:$0xff]  }
  0x27   : > { %308 = vst [vmem:[%s2376_s26 + $0x134] sm:$0xff] %v307_v40   ;;  %312 = vst [vmem:[%s2376_s26 + $0x13c] sm:$0xff] %v311_v41   ;;  %v319_v43 = vld [vmem:[%s2371_s25 + $0x278] sm:$0xff]   ;;  %v323_v44 = vld [vmem:[%s2371_s25 + $0x280] sm:$0xff]  }
  0x28   : > { %316 = vst [vmem:[%s2376_s26 + $0x144] sm:$0xff] %v315_v42   ;;  %320 = vst [vmem:[%s2376_s26 + $0x14c] sm:$0xff] %v319_v43   ;;  %v327_v45 = vld [vmem:[%s2371_s25 + $0x288] sm:$0xff]   ;;  %v331_v46 = vld [vmem:[%s2371_s25 + $0x290] sm:$0xff]  }
  0x29   : > { %324 = vst [vmem:[%s2376_s26 + $0x154] sm:$0xff] %v323_v44   ;;  %v335_v47 = vld [vmem:[%s2371_s25 + $0x298] sm:$0xff]   ;;  %328 = vst [vmem:[%s2376_s26 + $0x15c] sm:$0xff] %v327_v45   ;;  %v339_v48 = vld [vmem:[%s2371_s25 + $0x2a0] sm:$0xff]  }
  0x2a   : > { %332 = vst [vmem:[%s2376_s26 + $0x164] sm:$0xff] %v331_v46   ;;  %336 = vst [vmem:[%s2376_s26 + $0x16c] sm:$0xff] %v335_v47   ;;  %v343_v49 = vld [vmem:[%s2371_s25 + $0x2a8] sm:$0xff]   ;;  %v347_v50 = vld [vmem:[%s2371_s25 + $0x2b0] sm:$0xff]  }
  0x2b   : > { %340 = vst [vmem:[%s2376_s26 + $0x174] sm:$0xff] %v339_v48   ;;  %344 = vst [vmem:[%s2376_s26 + $0x17c] sm:$0xff] %v343_v49   ;;  %v351_v51 = vld [vmem:[%s2371_s25 + $0x2b8] sm:$0xf] }
  0x2c   : > { %348 = vst [vmem:[%s2376_s26 + $0x184] sm:$0xff] %v347_v50   ;;  %352 = vst [vmem:[%s2376_s26 + $0x18c] sm:$0xf] %v351_v51 }
  0x2d PF: > { %p1834_p5 = scmp.ge.s32.totalorder %s2315_s14, 1  ;;  %p574_p6 = scmp.lt.s32.totalorder %s2315_s14, 3 }
  0x2f   : > { %p575_p7 = pnand %p1834_p5, %p574_p6 }
  0x31   : > { %578 = sbr.rel (%p575_p7) target bundleno = 411 (0x19b), region = 69 }
  0x38   : > { %v2235_v52 = vld [vmem:[%s2778_s1] sm:$0xff]   ;;  %s581_s29 = sand.u32 1, %s2307_s12   ;;  %v2236_v53 = vld [vmem:[%s2778_s1 + $0x8] sm:$0xff]   ;;  %v2237_v54 = vld [vmem:[%s2778_s1 + $0x10] sm:$0xff]   ;;  %s605_s24 = smul.u32 25, %s1829_s15 }
  0x39   : > { %s2210_s5 = smul.u32 400, %s581_s29  ;;  %2077 = vmatprep.subr.bf16.mxu0 %v2235_v52  ;;  %2193 = vmatprep.subr.bf16.mxu1 %v2235_v52  ;;  %v2238_v55 = vld [vmem:[%s2778_s1 + $0x18] sm:$0xff]   ;;  %v2239_v58 = vld [vmem:[%s2778_s1 + $0x20] sm:$0xff]   ;;  %v2240_v59 = vld [vmem:[%s2778_s1 + $0x28] sm:$0xff]  }
  0x3a   : > { %2078 = vmatpush3.bf16.msra.mxu0 %v2235_v52  ;;  %2201 = vmatpush3.bf16.msra.mxu1 %v2235_v52  ;;  %v2241_v60 = vld [vmem:[%s2778_s1 + $0x30] sm:$0xff]   ;;  %v2242_v61 = vld [vmem:[%s2778_s1 + $0x38] sm:$0xff]   ;;  %p606_p8 = scmp.lt.s32.totalorder %s605_s24, 49 }
  0x3b   : > { %2079 = vmatprep.subr.bf16.mxu0 %v2236_v53  ;;  %2194 = vmatprep.subr.bf16.mxu1 %v2236_v53  ;;  %s2494_s10 = scalar_lea.vmem [#allocation2], %s2210_s5 }
  0x3c   : > { %v2243_v56 = vld [vmem:[%s2494_s10] sm:$0xff]   ;;  %v2244_v57 = vld [vmem:[%s2494_s10 + $0xd0] sm:$0xff]   ;;  %v2245_v62 = vld [vmem:[%s2494_s10 + $0x8] sm:$0xff]   ;;  %s2797_s24 = smov (!%p606_p8, %s605_s24), 49 }
  0x3d   : > { %2093 = vmatprep.mubr.bf16.mxu0 %v2243_v56  ;;  %2145 = vmatprep.mubr.bf16.mxu1 %v2244_v57  ;;  %v2246_v63 = vld [vmem:[%s2494_s10 + $0xd8] sm:$0xff]   ;;  %v2247_v0 = vld [vmem:[%s2494_s10 + $0x10] sm:$0xff]   ;;  %v2248_v1 = vld [vmem:[%s2494_s10 + $0xe0] sm:$0xff]   ;;  %s1835_s14 = sshll.u32 %s2797_s24, 2 }
  0x3e   : > { %2080 = vmatpush3.bf16.msra.mxu0 %v2236_v53  ;;  %2202 = vmatpush3.bf16.msra.mxu1 %v2236_v53  ;;  %v2249_v2 = vld [vmem:[%s2494_s10 + $0x18] sm:$0xff]   ;;  %v2250_v3 = vld [vmem:[%s2494_s10 + $0xe8] sm:$0xff]   ;;  %v2251_v4 = vld [vmem:[%s2494_s10 + $0x20] sm:$0xff]   ;;  %s2689_s28 = scalar_lea.vmem %s2780_s3, %s1835_s14 }
  0x3f   : > { %2081 = vmatprep.subr.bf16.mxu0 %v2237_v54  ;;  %2195 = vmatprep.subr.bf16.mxu1 %v2237_v54  ;;  %v2252_v5 = vld [vmem:[%s2494_s10 + $0xf0] sm:$0xff]   ;;  %v2253_v6 = vld [vmem:[%s2494_s10 + $0x28] sm:$0xff]   ;;  %v2254_v7 = vld [vmem:[%s2494_s10 + $0xf8] sm:$0xff]  }
  0x40   : > { %v2255_v8 = vld [vmem:[%s2494_s10 + $0x30] sm:$0xff]   ;;  %v2256_v9 = vld [vmem:[%s2494_s10 + $0x100] sm:$0xff]   ;;  %v2257_v10 = vld [vmem:[%s2494_s10 + $0x38] sm:$0xff]  }
  0x41   : > { %v2258_v11 = vld [vmem:[%s2494_s10 + $0x108] sm:$0xff]   ;;  %v2259_v12 = vld [vmem:[%s2494_s10 + $0x40] sm:$0xff]   ;;  %v2260_v13 = vld [vmem:[%s2494_s10 + $0x110] sm:$0xff]  }
  0x42   : > { %2082 = vmatpush3.bf16.msra.mxu0 %v2237_v54  ;;  %2203 = vmatpush3.bf16.msra.mxu1 %v2237_v54  ;;  %v2261_v14 = vld [vmem:[%s2494_s10 + $0x48] sm:$0xff]   ;;  %v2262_v15 = vld [vmem:[%s2494_s10 + $0x118] sm:$0xff]   ;;  %v2263_v16 = vld [vmem:[%s2494_s10 + $0x50] sm:$0xff]  }
  0x43   : > { %2083 = vmatprep.subr.bf16.mxu0 %v2238_v55  ;;  %2196 = vmatprep.subr.bf16.mxu1 %v2238_v55  ;;  %v2264_v17 = vld [vmem:[%s2494_s10 + $0x120] sm:$0xff]   ;;  %v2265_v18 = vld [vmem:[%s2494_s10 + $0x58] sm:$0xff]   ;;  %v2266_v19 = vld [vmem:[%s2494_s10 + $0x128] sm:$0xff]  }
  0x44   : > { %v2267_v20 = vld [vmem:[%s2494_s10 + $0x60] sm:$0xff]   ;;  %v2268_v21 = vld [vmem:[%s2494_s10 + $0x130] sm:$0xff]   ;;  %v2269_v22 = vld [vmem:[%s2494_s10 + $0x68] sm:$0xff]  }
  0x45   : > { %v2270_v23 = vld [vmem:[%s2494_s10 + $0x138] sm:$0xff]   ;;  %v2271_v24 = vld [vmem:[%s2494_s10 + $0x70] sm:$0xff]   ;;  %v2272_v25 = vld [vmem:[%s2494_s10 + $0x140] sm:$0xff]  }
  0x46   : > { %2084 = vmatpush3.bf16.msra.mxu0 %v2238_v55  ;;  %2204 = vmatpush3.bf16.msra.mxu1 %v2238_v55  ;;  %v2273_v26 = vld [vmem:[%s2494_s10 + $0x78] sm:$0xff]   ;;  %v2274_v27 = vld [vmem:[%s2494_s10 + $0x148] sm:$0xff]   ;;  %v2275_v28 = vld [vmem:[%s2494_s10 + $0x80] sm:$0xff]  }
  0x47   : > { %2085 = vmatprep.subr.bf16.mxu0 %v2239_v58  ;;  %2197 = vmatprep.subr.bf16.mxu1 %v2239_v58  ;;  %v2276_v29 = vld [vmem:[%s2494_s10 + $0x150] sm:$0xff]   ;;  %v2277_v30 = vld [vmem:[%s2494_s10 + $0x88] sm:$0xff]   ;;  %v2278_v31 = vld [vmem:[%s2494_s10 + $0x158] sm:$0xff]  }
  0x48   : > { %v2279_v32 = vld [vmem:[%s2494_s10 + $0x90] sm:$0xff]   ;;  %v2280_v33 = vld [vmem:[%s2494_s10 + $0x160] sm:$0xff]   ;;  %v2281_v34 = vld [vmem:[%s2494_s10 + $0x98] sm:$0xff]  }
  0x49   : > { %v2282_v35 = vld [vmem:[%s2494_s10 + $0x168] sm:$0xff]   ;;  %v2283_v36 = vld [vmem:[%s2494_s10 + $0xa0] sm:$0xff]   ;;  %v2284_v37 = vld [vmem:[%s2494_s10 + $0x170] sm:$0xff]  }
  0x4a   : > { %2086 = vmatpush3.bf16.msra.mxu0 %v2239_v58  ;;  %2205 = vmatpush3.bf16.msra.mxu1 %v2239_v58  ;;  %v2285_v38 = vld [vmem:[%s2494_s10 + $0xa8] sm:$0xff]   ;;  %v2286_v39 = vld [vmem:[%s2494_s10 + $0x178] sm:$0xff]   ;;  %v2287_v40 = vld [vmem:[%s2494_s10 + $0xb0] sm:$0xff]  }
  0x4b   : > { %2087 = vmatprep.subr.bf16.mxu0 %v2240_v59  ;;  %2198 = vmatprep.subr.bf16.mxu1 %v2240_v59  ;;  %v2288_v41 = vld [vmem:[%s2494_s10 + $0x180] sm:$0xff]   ;;  %v2289_v42 = vld [vmem:[%s2494_s10 + $0xb8] sm:$0xff]   ;;  %v2290_v43 = vld [vmem:[%s2494_s10 + $0x188] sm:$0xff]  }
  0x4c   : > { %v2291_v44 = vld [vmem:[%s2494_s10 + $0xc0] sm:$0xff]   ;;  %v2292_v45 = vld [vmem:[%s2494_s10 + $0xc8] sm:$0xff]  }
  0x4e   : > { %2088 = vmatpush3.bf16.msra.mxu0 %v2240_v59  ;;  %2206 = vmatpush3.bf16.msra.mxu1 %v2240_v59 }
  0x4f   : > { %2089 = vmatprep.subr.bf16.mxu0 %v2241_v60  ;;  %2199 = vmatprep.subr.bf16.mxu1 %v2241_v60 }
  0x52   : > { %2090 = vmatpush3.bf16.msra.mxu0 %v2241_v60  ;;  %2207 = vmatpush3.bf16.msra.mxu1 %v2241_v60 }
  0x53   : > { %2091 = vmatprep.subr.bf16.mxu0 %v2242_v61  ;;  %2200 = vmatprep.subr.bf16.mxu1 %v2242_v61 }
  0x56   : > { %2092 = vmatpush3.bf16.msra.mxu0 %v2242_v61  ;;  %2208 = vmatpush3.bf16.msra.mxu1 %v2242_v61 }
  0x59   : > { %2094 = vmatmul.mubr.bf16.vlgmr.msra.gmra.mrb[0].mxu0 %v2245_v62  ;;  %2146 = vmatmul.mubr.bf16.vlgmr.msra.gmra.mrb[0].mxu1 %v2246_v63 }
  0x5a   : > { %2097 = vmatprep.mubr.bf16.mxu0 %v2247_v0  ;;  %2149 = vmatprep.mubr.bf16.mxu1 %v2248_v1 }
  0x61   : > { %2098 = vmatmul.mubr.bf16.gmra.mrb[4].mxu0 %v2249_v2  ;;  %2150 = vmatmul.mubr.bf16.gmra.mrb[4].mxu1 %v2250_v3 }
  0x62   : > { %2101 = vmatprep.mubr.bf16.mxu0 %v2251_v4  ;;  %2153 = vmatprep.mubr.bf16.mxu1 %v2252_v5 }
  0x69   : > { %2102 = vmatmul.mubr.bf16.gmra.mrb[8].mxu0 %v2253_v6  ;;  %2154 = vmatmul.mubr.bf16.gmra.mrb[8].mxu1 %v2254_v7 }
  0x6a   : > { %2105 = vmatprep.mubr.bf16.mxu0 %v2255_v8  ;;  %2157 = vmatprep.mubr.bf16.mxu1 %v2256_v9 }
  0x71   : > { %2106 = vmatmul.mubr.bf16.gmra.mrb[12].mxu0 %v2257_v10  ;;  %2158 = vmatmul.mubr.bf16.gmra.mrb[12].mxu1 %v2258_v11 }
  0x72   : > { %2109 = vmatprep.mubr.bf16.mxu0 %v2259_v12  ;;  %2161 = vmatprep.mubr.bf16.mxu1 %v2260_v13 }
  0x79   : > { %2110 = vmatmul.mubr.bf16.gmra.mrb[16].mxu0 %v2261_v14  ;;  %2162 = vmatmul.mubr.bf16.gmra.mrb[16].mxu1 %v2262_v15 }
  0x7a   : > { %2113 = vmatprep.mubr.bf16.mxu0 %v2263_v16  ;;  %2165 = vmatprep.mubr.bf16.mxu1 %v2264_v17 }
  0x81   : > { %2114 = vmatmul.mubr.bf16.gmra.mrb[20].mxu0 %v2265_v18  ;;  %2166 = vmatmul.mubr.bf16.gmra.mrb[20].mxu1 %v2266_v19 }
  0x82   : > { %2117 = vmatprep.mubr.bf16.mxu0 %v2267_v20  ;;  %2169 = vmatprep.mubr.bf16.mxu1 %v2268_v21 }
  0x89   : > { %2118 = vmatmul.mubr.bf16.gmra.mrb[24].mxu0 %v2269_v22  ;;  %2170 = vmatmul.mubr.bf16.gmra.mrb[24].mxu1 %v2270_v23 }
  0x8a   : > { %2121 = vmatprep.mubr.bf16.mxu0 %v2271_v24  ;;  %2173 = vmatprep.mubr.bf16.mxu1 %v2272_v25 }
  0x91   : > { %2122 = vmatmul.mubr.bf16.gmra.mrb[28].mxu0 %v2273_v26  ;;  %2174 = vmatmul.mubr.bf16.gmra.mrb[28].mxu1 %v2274_v27 }
  0x92   : > { %2125 = vmatprep.mubr.bf16.mxu0 %v2275_v28  ;;  %2177 = vmatprep.mubr.bf16.mxu1 %v2276_v29 }
  0x99   : > { %2126 = vmatmul.mubr.bf16.gmra.mrb[32].mxu0 %v2277_v30  ;;  %2178 = vmatmul.mubr.bf16.gmra.mrb[32].mxu1 %v2278_v31 }
  0x9a   : > { %2129 = vmatprep.mubr.bf16.mxu0 %v2279_v32  ;;  %2181 = vmatprep.mubr.bf16.mxu1 %v2280_v33 }
  0xa1   : > { %2130 = vmatmul.mubr.bf16.gmra.mrb[36].mxu0 %v2281_v34  ;;  %2182 = vmatmul.mubr.bf16.gmra.mrb[36].mxu1 %v2282_v35 }
  0xa2   : > { %2133 = vmatprep.mubr.bf16.mxu0 %v2283_v36  ;;  %2185 = vmatprep.mubr.bf16.mxu1 %v2284_v37 }
  0xa9   : > { %2134 = vmatmul.mubr.bf16.gmra.mrb[40].mxu0 %v2285_v38  ;;  %2186 = vmatmul.mubr.bf16.gmra.mrb[40].mxu1 %v2286_v39 }
  0xaa   : > { %2137 = vmatprep.mubr.bf16.mxu0 %v2287_v40  ;;  %2189 = vmatprep.mubr.bf16.mxu1 %v2288_v41 }
  0xb1   : > { %2138 = vmatmul.mubr.bf16.gmra.mrb[44].mxu0 %v2289_v42  ;;  %2190 = vmatmul.mubr.bf16.gmra.mrb[44].mxu1 %v2290_v43 }
  0xb2   : > { %2141 = vmatprep.mubr.bf16.mxu0 %v2291_v44 }
  0xb9   : > { %2142 = vmatmul.mubr.bf16.gmra.mrb[48].mxu0 %v2292_v45  ;;  %v2672_v45 = vld [vmem:[%s2779_s2] ss:$0 sm:$0xff] }
 0x12c   : > { %v2558_v46 = vpop.f32.mrb[0].mxu0  ;;  %v2560_v47 = vpop.f32.mrb[0].mxu1 }
 0x12d   : > { %v2562_v48 = vpop.f32.mrb[1].mxu0  ;;  %v1318_v49 = vpop.f32.mrb[1].mxu1 }
 0x12e   : > { %v2564_v50 = vpop.f32.mrb[2].mxu0  ;;  %v2566_v51 = vpop.f32.mrb[2].mxu1 }
 0x12f   : > { %v2568_v52 = vpop.f32.mrb[3].mxu0  ;;  %v2570_v53 = vpop.f32.mrb[3].mxu1 }
 0x130   : > { %2783 = vst [vmem:[#allocation3_spill] sm:$0xff] %v2568_v52 }
 0x134   : > { %v2572_v54 = vpop.f32.mrb[4].mxu0  ;;  %v2574_v55 = vpop.f32.mrb[4].mxu1 }
 0x135   : > { %v2576_v56 = vpop.f32.mrb[5].mxu0  ;;  %v2578_v57 = vpop.f32.mrb[5].mxu1 }
 0x136   : > { %v2580_v58 = vpop.f32.mrb[6].mxu0  ;;  %v2582_v59 = vpop.f32.mrb[6].mxu1 }
 0x137   : > { %v2584_v60 = vpop.f32.mrb[7].mxu0  ;;  %v2586_v61 = vpop.f32.mrb[7].mxu1 }
 0x13c   : > { %v2588_v62 = vpop.f32.mrb[8].mxu0  ;;  %v2590_v63 = vpop.f32.mrb[8].mxu1 }
 0x13d   : > { %v2592_v0 = vpop.f32.mrb[9].mxu0  ;;  %v2594_v1 = vpop.f32.mrb[9].mxu1 }
 0x13e   : > { %v2596_v2 = vpop.f32.mrb[10].mxu0  ;;  %v2598_v3 = vpop.f32.mrb[10].mxu1 }
 0x13f   : > { %v2600_v4 = vpop.f32.mrb[11].mxu0  ;;  %v2602_v5 = vpop.f32.mrb[11].mxu1 }
 0x144   : > { %v2604_v6 = vpop.f32.mrb[12].mxu0  ;;  %v2606_v7 = vpop.f32.mrb[12].mxu1 }
 0x145   : > { %v2608_v8 = vpop.f32.mrb[13].mxu0  ;;  %v2610_v9 = vpop.f32.mrb[13].mxu1 }
 0x146   : > { %v2612_v10 = vpop.f32.mrb[14].mxu0  ;;  %v2614_v11 = vpop.f32.mrb[14].mxu1 }
 0x147   : > { %v2616_v12 = vpop.f32.mrb[15].mxu0  ;;  %v2618_v13 = vpop.f32.mrb[15].mxu1 }
 0x14c   : > { %v2620_v14 = vpop.f32.mrb[16].mxu0  ;;  %v2622_v15 = vpop.f32.mrb[16].mxu1 }
 0x14d   : > { %v2624_v16 = vpop.f32.mrb[17].mxu0  ;;  %v2626_v17 = vpop.f32.mrb[17].mxu1 }
 0x14e   : > { %v2628_v18 = vpop.f32.mrb[18].mxu0  ;;  %v2630_v19 = vpop.f32.mrb[18].mxu1 }
 0x14f   : > { %v2632_v20 = vpop.f32.mrb[19].mxu0  ;;  %v2634_v21 = vpop.f32.mrb[19].mxu1 }
 0x154   : > { %v2636_v22 = vpop.f32.mrb[20].mxu0  ;;  %v2638_v23 = vpop.f32.mrb[20].mxu1 }
 0x155   : > { %v2640_v24 = vpop.f32.mrb[21].mxu0  ;;  %v2642_v25 = vpop.f32.mrb[21].mxu1 }
 0x156   : > { %v2644_v26 = vpop.f32.mrb[22].mxu0  ;;  %v2646_v27 = vpop.f32.mrb[22].mxu1 }
 0x157   : > { %v2648_v28 = vpop.f32.mrb[23].mxu0  ;;  %v2650_v29 = vpop.f32.mrb[23].mxu1 }
 0x15c   : > { %v2652_v30 = vpop.f32.mrb[24].mxu0  ;;  %v2171_v31 = vpop.f32.mrb[24].mxu1 }
 0x15d   : > { %2784 = vst [vmem:[#allocation4_spill] sm:$0xff] %v2652_v30  ;;  %v1537_v33 = vmax.f32 %v2570_v53, %v2171_v31  ;;  %v2657_v34 = vpop.f32.mrb[25].mxu0  ;;  %v2659_v35 = vpop.f32.mrb[25].mxu1 }
 0x15e   : > { %2785 = vst [vmem:[#allocation5_spill] sm:$0xff] %v2657_v34  ;;  %2786 = vst [vmem:[#allocation6_spill] sm:$0xff] %v2659_v35  ;;  %v2120_v36 = vpop.f32.mrb[26].mxu0  ;;  %v2172_v37 = vpop.f32.mrb[26].mxu1 }
 0x15f   : > { %v1511_v38 = vmax.f32 %v2558_v46, %v2120_v36  ;;  %v1538_v39 = vmax.f32 %v2560_v47, %v2172_v37  ;;  %v2665_v40 = vpop.f32.mrb[27].mxu0  ;;  %v1417_v41 = vpop.f32.mrb[27].mxu1 }
 0x160   : > { %v1536_v43 = vmax.f32 %v1318_v49, %v1417_v41 }
 0x162   : > { %v1561_v44 = vmax.f32 %v1511_v38, %v1536_v43 }
 0x164   : > { %v2123_v53 = vpop.f32.mrb[28].mxu0  ;;  %v2175_v31 = vpop.f32.mrb[28].mxu1  ;;  %v1593_v43 = vadd.f32 %v2672_v45, %v1561_v44 }
 0x165   : > { %v1514_v46 = vmax.f32 %v2584_v60, %v2123_v53  ;;  %v1541_v47 = vmax.f32 %v2586_v61, %v2175_v31  ;;  %v1222_v36 = vpop.f32.mrb[29].mxu0  ;;  %v1430_v37 = vpop.f32.mrb[29].mxu1 }
 0x166   : > { %v1512_v32 = vmax.f32 %v2564_v50, %v1222_v36  ;;  %v1539_v49 = vmax.f32 %v2566_v51, %v1430_v37  ;;  %v2124_v38 = vpop.f32.mrb[30].mxu0  ;;  %v2176_v41 = vpop.f32.mrb[30].mxu1  ;;  %v1618_v44 = vmax.f32 %v1593_v43, 0.0 }
 0x167   : > { %v1515_v42 = vmax.f32 %v2572_v54, %v2124_v38  ;;  %v1542_v30 = vmax.f32 %v2574_v55, %v2176_v41  ;;  %v1225_v52 = vpop.f32.mrb[31].mxu0  ;;  %v1433_v34 = vpop.f32.mrb[31].mxu1 }
 0x168   : > { %v1562_v60 = vmax.f32 %v1512_v32, %v1537_v33  ;;  %v1564_v53 = vmax.f32 %v1514_v46, %v1539_v49  ;;  %v1513_v61 = vmax.f32 %v2576_v56, %v1225_v52  ;;  %v1540_v31 = vmax.f32 %v2578_v57, %v1433_v34 }
 0x16a   : > { %v1594_v50 = vadd.f32 %v2672_v45, %v1562_v60  ;;  %v1596_v51 = vadd.f32 %v2672_v45, %v1564_v53  ;;  %v1563_v36 = vmax.f32 %v1513_v61, %v1538_v39  ;;  %v1565_v37 = vmax.f32 %v1515_v42, %v1540_v31 }
 0x16c   : > { %v1619_v35 = vmax.f32 %v1594_v50, 0.0  ;;  %v1595_v54 = vadd.f32 %v2672_v45, %v1563_v36  ;;  %v2127_v55 = vpop.f32.mrb[32].mxu0  ;;  %v2179_v38 = vpop.f32.mrb[32].mxu1  ;;  %v1621_v34 = vmax.f32 %v1596_v51, 0.0  ;;  %v1597_v41 = vadd.f32 %v2672_v45, %v1565_v37 }
 0x16d   : > { %v1518_v52 = vmax.f32 %v2600_v4, %v2127_v55  ;;  %v1545_v56 = vmax.f32 %v2602_v5, %v2179_v38  ;;  %v1238_v57 = vpop.f32.mrb[33].mxu0  ;;  %v1446_v32 = vpop.f32.mrb[33].mxu1 }
 0x16e   : > { %v1956_v33 = vpack.c.bf16 %v1619_v35, %v1618_v44  ;;  %v1620_v39 = vmax.f32 %v1595_v54, 0.0  ;;  %v1516_v42 = vmax.f32 %v2580_v58, %v1238_v57  ;;  %v2128_v46 = vpop.f32.mrb[34].mxu0  ;;  %v2180_v49 = vpop.f32.mrb[34].mxu1  ;;  %v1543_v43 = vmax.f32 %v2582_v59, %v1446_v32 }
 0x16f   : > { %v1519_v60 = vmax.f32 %v2588_v62, %v2128_v46  ;;  %v1546_v4 = vmax.f32 %v2590_v63, %v2180_v49  ;;  %v1241_v53 = vpop.f32.mrb[35].mxu0  ;;  %v1449_v5 = vpop.f32.mrb[35].mxu1  ;;  %v1622_v62 = vmax.f32 %v1597_v41, 0.0 }
 0x170   : > { %2008 = vst [vmem:[%s2689_s28 + $0x8] sm:$0xff] %v1956_v33   ;;  %v1961_v61 = vpack.c.bf16 %v1621_v34, %v1620_v39  ;;  %v1566_v35 = vmax.f32 %v1516_v42, %v1541_v47  ;;  %v1517_v31 = vmax.f32 %v2592_v0, %v1241_v53  ;;  %v1544_v50 = vmax.f32 %v2594_v1, %v1449_v5 }
 0x171   : > { %v1568_v58 = vmax.f32 %v1518_v52, %v1543_v43 }
 0x172   : > { %2009 = vst [vmem:[%s2689_s28 + $0x10] sm:$0xff] %v1961_v61   ;;  %v1598_v51 = vadd.f32 %v2672_v45, %v1566_v35  ;;  %v1567_v36 = vmax.f32 %v1517_v31, %v1542_v30  ;;  %v1569_v37 = vmax.f32 %v1519_v60, %v1544_v50 }
 0x173   : > { %v1600_v59 = vadd.f32 %v2672_v45, %v1568_v58 }
 0x174   : > { %v1623_v44 = vmax.f32 %v1598_v51, 0.0  ;;  %v1599_v63 = vadd.f32 %v2672_v45, %v1567_v36  ;;  %v2131_v54 = vpop.f32.mrb[36].mxu0  ;;  %v2183_v55 = vpop.f32.mrb[36].mxu1  ;;  %v1601_v39 = vadd.f32 %v2672_v45, %v1569_v37 }
 0x175   : > { %v1522_v47 = vmax.f32 %v2616_v12, %v2131_v54  ;;  %v1549_v0 = vmax.f32 %v2618_v13, %v2183_v55  ;;  %v1254_v1 = vpop.f32.mrb[37].mxu0  ;;  %v1462_v38 = vpop.f32.mrb[37].mxu1  ;;  %v1625_v57 = vmax.f32 %v1600_v59, 0.0 }
 0x176   : > { %v1966_v52 = vpack.c.bf16 %v1623_v44, %v1622_v62  ;;  %v1624_v32 = vmax.f32 %v1599_v63, 0.0  ;;  %v1520_v30 = vmax.f32 %v2596_v2, %v1254_v1  ;;  %v2132_v33 = vpop.f32.mrb[38].mxu0  ;;  %v2184_v34 = vpop.f32.mrb[38].mxu1  ;;  %v1547_v42 = vmax.f32 %v2598_v3, %v1462_v38 }
 0x177   : > { %v1523_v46 = vmax.f32 %v2604_v6, %v2132_v33  ;;  %v1550_v12 = vmax.f32 %v2606_v7, %v2184_v34  ;;  %v1257_v49 = vpop.f32.mrb[39].mxu0  ;;  %v1465_v13 = vpop.f32.mrb[39].mxu1  ;;  %v1626_v6 = vmax.f32 %v1601_v39, 0.0 }
 0x178   : > { %2010 = vst [vmem:[%s2689_s28 + $0x18] sm:$0xff] %v1966_v52   ;;  %v1971_v41 = vpack.c.bf16 %v1625_v57, %v1624_v32  ;;  %v1570_v43 = vmax.f32 %v1520_v30, %v1545_v56  ;;  %v1521_v60 = vmax.f32 %v2608_v8, %v1257_v49  ;;  %v1548_v53 = vmax.f32 %v2610_v9, %v1465_v13 }
 0x179   : > { %v1572_v2 = vmax.f32 %v1522_v47, %v1547_v42 }
 0x17a   : > { %2011 = vst [vmem:[%s2689_s28 + $0x20] sm:$0xff] %v1971_v41   ;;  %v1602_v5 = vadd.f32 %v2672_v45, %v1570_v43  ;;  %v1571_v61 = vmax.f32 %v1521_v60, %v1546_v4  ;;  %v1573_v35 = vmax.f32 %v1523_v46, %v1548_v53 }
 0x17b   : > { %v1604_v3 = vadd.f32 %v2672_v45, %v1572_v2 }
 0x17c   : > { %v1627_v31 = vmax.f32 %v1602_v5, 0.0  ;;  %v1603_v7 = vadd.f32 %v2672_v45, %v1571_v61  ;;  %v2135_v50 = vpop.f32.mrb[40].mxu0  ;;  %v2187_v58 = vpop.f32.mrb[40].mxu1  ;;  %v1605_v63 = vadd.f32 %v2672_v45, %v1573_v35 }
 0x17d   : > { %v1526_v56 = vmax.f32 %v2632_v20, %v2135_v50  ;;  %v1553_v8 = vmax.f32 %v2634_v21, %v2187_v58  ;;  %v1270_v9 = vpop.f32.mrb[41].mxu0  ;;  %v1478_v51 = vpop.f32.mrb[41].mxu1  ;;  %v1629_v37 = vmax.f32 %v1604_v3, 0.0 }
 0x17e   : > { %v1976_v36 = vpack.c.bf16 %v1627_v31, %v1626_v6  ;;  %v1628_v59 = vmax.f32 %v1603_v7, 0.0  ;;  %v1524_v4 = vmax.f32 %v2612_v10, %v1270_v9  ;;  %v2136_v62 = vpop.f32.mrb[42].mxu0  ;;  %v2188_v44 = vpop.f32.mrb[42].mxu1  ;;  %v1551_v54 = vmax.f32 %v2614_v11, %v1478_v51 }
 0x17f   : > { %v1527_v55 = vmax.f32 %v2620_v14, %v2136_v62  ;;  %v1554_v20 = vmax.f32 %v2622_v15, %v2188_v44  ;;  %v1273_v47 = vpop.f32.mrb[43].mxu0  ;;  %v1481_v21 = vpop.f32.mrb[43].mxu1  ;;  %v1630_v14 = vmax.f32 %v1605_v63, 0.0  ;;  %v2788_v44 = vld [vmem:[#allocation6_spill] sm:$0xff] }
 0x180   : > { %2012 = vst [vmem:[%s2689_s28 + $0x28] sm:$0xff] %v1976_v36   ;;  %v1981_v1 = vpack.c.bf16 %v1629_v37, %v1628_v59  ;;  %v1574_v38 = vmax.f32 %v1524_v4, %v1549_v0  ;;  %v1525_v52 = vmax.f32 %v2624_v16, %v1273_v47  ;;  %v1552_v57 = vmax.f32 %v2626_v17, %v1481_v21  ;;  %v2789_v47 = vld [vmem:[#allocation5_spill] sm:$0xff] }
 0x181   : > { %v1576_v10 = vmax.f32 %v1526_v56, %v1551_v54  ;;  %v2787_v4 = vmax.f32 %v2562_v48, %v2665_v40 }
 0x182   : > { %2013 = vst [vmem:[%s2689_s28 + $0x30] sm:$0xff] %v1981_v1   ;;  %v1606_v32 = vadd.f32 %v2672_v45, %v1574_v38  ;;  %v1575_v30 = vmax.f32 %v1525_v52, %v1550_v12  ;;  %v1577_v33 = vmax.f32 %v1527_v55, %v1552_v57  ;;  %v2790_v38 = vld [vmem:[#allocation3_spill] sm:$0xff] }
 0x183   : > { %v1608_v11 = vadd.f32 %v2672_v45, %v1576_v10 }
 0x184   : > { %v1631_v34 = vmax.f32 %v1606_v32, 0.0  ;;  %v1607_v15 = vadd.f32 %v2672_v45, %v1575_v30  ;;  %v2139_v39 = vpop.f32.mrb[44].mxu0  ;;  %v2191_v42 = vpop.f32.mrb[44].mxu1  ;;  %v1609_v53 = vadd.f32 %v2672_v45, %v1577_v33 }
 0x185   : > { %v1530_v0 = vmax.f32 %v2648_v28, %v2139_v39  ;;  %v1557_v16 = vmax.f32 %v2650_v29, %v2191_v42  ;;  %v1286_v17 = vpop.f32.mrb[45].mxu0  ;;  %v1494_v46 = vpop.f32.mrb[45].mxu1  ;;  %v1633_v13 = vmax.f32 %v1608_v11, 0.0 }
 0x186   : > { %v1986_v49 = vpack.c.bf16 %v1631_v34, %v1630_v14  ;;  %v1632_v41 = vmax.f32 %v1607_v15, 0.0  ;;  %v1528_v12 = vmax.f32 %v2628_v18, %v1286_v17  ;;  %v2140_v43 = vpop.f32.mrb[46].mxu0  ;;  %v2192_v60 = vpop.f32.mrb[46].mxu1  ;;  %v1555_v2 = vmax.f32 %v2630_v19, %v1494_v46 }
 0x187   : > { %v1531_v5 = vmax.f32 %v2636_v22, %v2140_v43  ;;  %v1558_v28 = vmax.f32 %v2638_v23, %v2192_v60  ;;  %v1289_v61 = vpop.f32.mrb[47].mxu0  ;;  %v1497_v29 = vpop.f32.mrb[47].mxu1  ;;  %v1634_v22 = vmax.f32 %v1609_v53, 0.0 }
 0x188   : > { %2014 = vst [vmem:[%s2689_s28 + $0x38] sm:$0xff] %v1986_v49   ;;  %v1991_v35 = vpack.c.bf16 %v1633_v13, %v1632_v41  ;;  %v1578_v3 = vmax.f32 %v1528_v12, %v1553_v8  ;;  %v1529_v6 = vmax.f32 %v2640_v24, %v1289_v61  ;;  %v1556_v31 = vmax.f32 %v2642_v25, %v1497_v29 }
 0x189   : > { %v1580_v18 = vmax.f32 %v1530_v0, %v1555_v2 }
 0x18a   : > { %2015 = vst [vmem:[%s2689_s28 + $0x40] sm:$0xff] %v1991_v35   ;;  %v1610_v7 = vadd.f32 %v2672_v45, %v1578_v3  ;;  %v1579_v50 = vmax.f32 %v1529_v6, %v1554_v20  ;;  %v1581_v58 = vmax.f32 %v1531_v5, %v1556_v31 }
 0x18b   : > { %v1612_v19 = vadd.f32 %v2672_v45, %v1580_v18 }
 0x18c   : > { %v1635_v23 = vmax.f32 %v1610_v7, 0.0  ;;  %v1611_v56 = vadd.f32 %v2672_v45, %v1579_v50  ;;  %v2143_v9 = vpop.f32.mrb[48].mxu0  ;;  %v1613_v20 = vadd.f32 %v2672_v45, %v1581_v58 }
 0x18d   : > { %v1534_v8 = vmax.f32 %v2143_v9, %v2646_v27  ;;  %v1302_v51 = vpop.f32.mrb[49].mxu0  ;;  %v1637_v25 = vmax.f32 %v1612_v19, 0.0 }
 0x18e   : > { %v1996_v24 = vpack.c.bf16 %v1635_v23, %v1634_v22  ;;  %v1636_v36 = vmax.f32 %v1611_v56, 0.0  ;;  %v1532_v37 = vmax.f32 %v2644_v26, %v1302_v51  ;;  %v2144_v59 = vpop.f32.mrb[50].mxu0  ;;  %v2791_v26 = vld [vmem:[#allocation4_spill] sm:$0xff]  ;;  %v1638_v32 = vmax.f32 %v1613_v20, 0.0 }
 0x18f   : > { %v1559_v62 = vmax.f32 %v2787_v4, %v1534_v8  ;;  %v1535_v63 = vmax.f32 %v2144_v59, %v2788_v44  ;;  %v1305_v54 = vpop.f32.mrb[51].mxu0  ;;  %v2792_v52 = vmax.f32 %v2790_v38, %v2791_v26 }
 0x190   : > { %2016 = vst [vmem:[%s2689_s28 + $0x48] sm:$0xff] %v1996_v24   ;;  %v2001_v55 = vpack.c.bf16 %v1637_v25, %v1636_v36  ;;  %v1582_v27 = vmax.f32 %v1532_v37, %v1557_v16  ;;  %v1533_v21 = vmax.f32 %v2789_v47, %v1305_v54 }
 0x191   : > { %v1591_v1 = vadd.f32 %v2672_v45, %v1559_v62  ;;  %v1560_v57 = vmax.f32 %v2792_v52, %v1535_v63 }
 0x192   : > { %2017 = vst [vmem:[%s2689_s28 + $0x50] sm:$0xff] %v2001_v55   ;;  %v1614_v48 = vadd.f32 %v2672_v45, %v1582_v27  ;;  %v1583_v40 = vmax.f32 %v1533_v21, %v1558_v28 }
 0x193   : > { %v1592_v10 = vadd.f32 %v2672_v45, %v1560_v57  ;;  %v1616_v11 = vmax.f32 %v1591_v1, 0.0 }
 0x194   : > { %v1639_v30 = vmax.f32 %v1614_v48, 0.0  ;;  %v1615_v33 = vadd.f32 %v2672_v45, %v1583_v40 }
 0x195   : > { %v1617_v14 = vmax.f32 %v1592_v10, 0.0 }
 0x196   : > { %v2006_v34 = vpack.c.bf16 %v1639_v30, %v1638_v32  ;;  %v1640_v15 = vmax.f32 %v1615_v33, 0.0 }
 0x197   : > { %v1951_v39 = vpack.c.bf16 %v1617_v14, %v1616_v11 }
 0x198   : > { %2018 = vst [vmem:[%s2689_s28 + $0x58] sm:$0xff] %v2006_v34   ;;  %v1947_v42 = vpack.c.bf16 %v1640_v15, %v1640_v15 }
 0x199   : > { %1952 = vst [vmem:[%s2689_s28] sm:$0xff] %v1951_v39  }
 0x19a   : > { %1766 = vst [vmem:[%s2689_s28 + $0x60] sm:$0xf] %v1947_v42 }
 0x19b PF: > { %p10_p9 = scmp.ge.s32.totalorder %s2354_s16, 4   ;;  %s2793_s12 = smov %s2311_s13 }
 0x19c   : > { %s2794_s13 = smov %s2363_s19  ;;  %s2795_s14 = smov %s2354_s16 }
 0x19d   :  { %12 = sbr.rel (!%p10_p9) target bundleno = 2 (0x2), region = 108 }

// kernel: net_forward.5
= control target key start
LH: loop header
LB: loop body
LE: loop exit
PB: predicated region body
PF: predicated region fallthrough
CT: control target
= control target key end

     0   :  { %v741_v0 = vmov 0   ;;  %vm249_vm0 = vcmask 130048   ;;  %v742_v32 = vmov 0.0   ;;  %vm743_vm1 = vmmov 0   ;;  %s952_s1 = inlined_call_operand.vmem [shape: bf16[400,128], index: 1, kind: input, shape index: {}]   ;;  %s953_s0 = inlined_call_operand.vmem [shape: bf16[8,400], index: 0, kind: input, shape index: {}]   ;;  %s954_s3 = inlined_call_operand.vmem [shape: bf16[128,128], index: 3, kind: input, shape index: {}]   ;;  %s955_s5 = inlined_call_operand.vmem [shape: bf16[128,128], index: 5, kind: input, shape index: {}]   ;;  %s956_s2 = inlined_call_operand.vmem [shape: f32[1,128], index: 2, kind: input, shape index: {}]   ;;  %s957_s4 = inlined_call_operand.vmem [shape: f32[1,128], index: 4, kind: input, shape index: {}]   ;;  %s958_s6 = inlined_call_operand.vmem [shape: f32[1,128], index: 6, kind: input, shape index: {}]   ;;  %s959_s7 = inlined_call_operand.vmem [shape: f32[8,128], index: 7, kind: output, shape index: {}]  }
   0x1   :  { %293 = vmatprep.subr.bf16.mxu1 %v741_v0  ;;  %v696_v1 = vld [vmem:[%s952_s1 + $0x40] sm:$0xff]   ;;  %v699_v4 = vld [vmem:[%s952_s1 + $0x48] sm:$0xff]   ;;  %v702_v7 = vld [vmem:[%s952_s1 + $0x50] sm:$0xff]  }
   0x2   :  { %v697_v2 = vld [vmem:[%s952_s1 + $0x80] sm:$0xff]   ;;  %613 = vmatprep.subr.bf16.mxu0 %v696_v1  ;;  %v700_v5 = vld [vmem:[%s952_s1 + $0x88] sm:$0xff]   ;;  %v703_v8 = vld [vmem:[%s952_s1 + $0x90] sm:$0xff]  }
   0x3   :  { %v698_v3 = vld [vmem:[%s952_s1] sm:$0xff]   ;;  %294 = vmatpush1.bf16.msra.mxu1 %v697_v2  ;;  %v701_v6 = vld [vmem:[%s952_s1 + $0x8] sm:$0xff]   ;;  %v704_v9 = vld [vmem:[%s952_s1 + $0x10] sm:$0xff]  }
   0x4   :  { %614 = vmatpush3.bf16.msra.mxu0 %v698_v3  ;;  %295 = vmatprep.subr.bf16.mxu1 %v741_v0  ;;  %v705_v10 = vld [vmem:[%s952_s1 + $0x58] sm:$0xff]   ;;  %v708_v13 = vld [vmem:[%s952_s1 + $0x60] sm:$0xff]   ;;  %v711_v16 = vld [vmem:[%s952_s1 + $0x68] sm:$0xff]  }
   0x5   :  { %615 = vmatprep.subr.bf16.mxu0 %v699_v4  ;;  %v706_v11 = vld [vmem:[%s952_s1 + $0x98] sm:$0xff]   ;;  %v709_v14 = vld [vmem:[%s952_s1 + $0xa0] sm:$0xff]   ;;  %v712_v17 = vld [vmem:[%s952_s1 + $0xa8] sm:$0xff]  }
   0x6   :  { %v707_v12 = vld [vmem:[%s952_s1 + $0x18] sm:$0xff]   ;;  %v710_v15 = vld [vmem:[%s952_s1 + $0x20] sm:$0xff]   ;;  %v713_v18 = vld [vmem:[%s952_s1 + $0x28] sm:$0xff]  }
   0x7   :  { %296 = vmatpush1.bf16.msra.mxu1 %v700_v5  ;;  %v714_v19 = vld [vmem:[%s952_s1 + $0x70] sm:$0xff]   ;;  %v27_v22 = vld [vmem:[%s953_s0] sm:$0xff]  ;;  %v717_v23 = vld [vmem:[%s952_s1 + $0x78] sm:$0xff]  }
   0x8   :  { %616 = vmatpush3.bf16.msra.mxu0 %v701_v6  ;;  %297 = vmatprep.subr.bf16.mxu1 %v741_v0  ;;  %v715_v20 = vld [vmem:[%s952_s1 + $0xb0] sm:$0xff]   ;;  %v566_v24 = vcombine.high %v27_v22, %v27_v22  ;;  %v28_v25 = vld [vmem:[%s953_s0 + $0x8] sm:$0xff]  ;;  %v718_v27 = vld [vmem:[%s952_s1 + $0xb8] sm:$0xff]   ;;  %v565_v30 = vcombine.low %v27_v22, %v27_v22 }
   0x9   :  { %617 = vmatprep.subr.bf16.mxu0 %v702_v7  ;;  %v716_v21 = vld [vmem:[%s952_s1 + $0x30] sm:$0xff]   ;;  %v568_v26 = vcombine.high %v28_v25, %v28_v25  ;;  %v719_v28 = vld [vmem:[%s952_s1 + $0x38] sm:$0xff]   ;;  %v722_v29 = vld [vmem:[%s952_s1 + $0xc0] sm:$0xff]   ;;  %v567_v33 = vcombine.low %v28_v25, %v28_v25 }
   0xa   :  { %285 = vmatprep.mubr.bf16.mxu0 %v566_v24  ;;  %v725_v31 = vld [vmem:[%s954_s3] sm:$0xff]   ;;  %v726_v34 = vld [vmem:[%s954_s3 + $0x8] sm:$0xff]   ;;  %v727_v35 = vld [vmem:[%s954_s3 + $0x10] sm:$0xff]  }
   0xb   :  { %298 = vmatpush1.bf16.msra.mxu1 %v703_v8  ;;  %594 = vmatprep.mubr.msk.bf16.mxu1 %vm249_vm0, %v568_v26  ;;  %v728_v36 = vld [vmem:[%s954_s3 + $0x18] sm:$0xff]   ;;  %v729_v37 = vld [vmem:[%s954_s3 + $0x20] sm:$0xff]   ;;  %v730_v38 = vld [vmem:[%s954_s3 + $0x28] sm:$0xff]  }
   0xc   :  { %618 = vmatpush3.bf16.msra.mxu0 %v704_v9  ;;  %299 = vmatprep.subr.bf16.mxu1 %v741_v0  ;;  %v731_v39 = vld [vmem:[%s954_s3 + $0x30] sm:$0xff]   ;;  %v732_v40 = vld [vmem:[%s954_s3 + $0x38] sm:$0xff]   ;;  %v733_v41 = vld [vmem:[%s955_s5] sm:$0xff]  }
   0xd   :  { %619 = vmatprep.subr.bf16.mxu0 %v705_v10  ;;  %v734_v42 = vld [vmem:[%s955_s5 + $0x8] sm:$0xff]   ;;  %v735_v43 = vld [vmem:[%s955_s5 + $0x10] sm:$0xff]   ;;  %v736_v44 = vld [vmem:[%s955_s5 + $0x18] sm:$0xff]  }
   0xe   :  { %v737_v45 = vld [vmem:[%s955_s5 + $0x20] sm:$0xff]   ;;  %v738_v46 = vld [vmem:[%s955_s5 + $0x28] sm:$0xff]   ;;  %v739_v61 = vld [vmem:[%s955_s5 + $0x30] sm:$0xff]  }
   0xf   :  { %300 = vmatpush1.bf16.msra.mxu1 %v706_v11  ;;  %v564_v49 = vld [vmem:[%s956_s2] ss:$0 sm:$0xff]  ;;  %v740_v62 = vld [vmem:[%s955_s5 + $0x38] sm:$0xff]  }
  0x10   :  { %620 = vmatpush3.bf16.msra.mxu0 %v707_v12  ;;  %301 = vmatprep.subr.bf16.mxu1 %v741_v0  ;;  %v595_v63 = vld [vmem:[%s957_s4] ss:$0 sm:$0xff] }
  0x11   :  { %621 = vmatprep.subr.bf16.mxu0 %v708_v13  ;;  %v604_v7 = vld [vmem:[%s958_s6] ss:$0 sm:$0xff] }
  0x13   :  { %302 = vmatpush1.bf16.msra.mxu1 %v709_v14 }
  0x14   :  { %622 = vmatpush3.bf16.msra.mxu0 %v710_v15  ;;  %303 = vmatprep.subr.bf16.mxu1 %v741_v0 }
  0x15   :  { %623 = vmatprep.subr.bf16.mxu0 %v711_v16 }
  0x17   :  { %304 = vmatpush1.bf16.msra.mxu1 %v712_v17 }
  0x18   :  { %624 = vmatpush3.bf16.msra.mxu0 %v713_v18  ;;  %305 = vmatprep.subr.bf16.mxu1 %v741_v0 }
  0x19   :  { %625 = vmatprep.subr.bf16.mxu0 %v714_v19 }
  0x1b   :  { %306 = vmatpush1.bf16.msra.mxu1 %v715_v20 }
  0x1c   :  { %626 = vmatpush3.bf16.msra.mxu0 %v716_v21  ;;  %307 = vmatprep.subr.bf16.mxu1 %v741_v0 }
  0x1d   :  { %627 = vmatprep.subr.bf16.mxu0 %v717_v23 }
  0x1f   :  { %308 = vmatpush1.bf16.msra.mxu1 %v718_v27 }
  0x20   :  { %628 = vmatpush3.bf16.msra.mxu0 %v719_v28  ;;  %309 = vmatprep.subr.bf16.mxu1 %v741_v0 }
  0x21   :  { %653 = vmatprep.subr.bf16.mxu0 %v742_v32 }
  0x23   :  { %286 = vmatmul.mubr.bf16.vlgmr.msra.gmra.mrb[0].mxu0 %v565_v30  ;;  %310 = vmatpush1.bf16.msra.mxu1 %v722_v29 }
  0x24   :  { %654 = vmatpush3.bf16.msra.mxu0 %v725_v31  ;;  %673 = vmatprep.subr.bf16.mxu1 %v742_v32 }
  0x25   :  { %655 = vmatprep.subr.bf16.mxu0 %v742_v32  ;;  %669 = vmatprep.mubr.msk.bf16.mxu0 %vm743_vm1, %v742_v32 }
  0x26   :  { %326 = vmatmul.mubr.bf16.vlgmr.msra.gmra.mrb[0].mxu1 %v567_v33 }
  0x27   :  { %689 = vmatprep.mubr.msk.bf16.mxu1 %vm743_vm1, %v742_v32  ;;  %674 = vmatpush3.bf16.msra.mxu1 %v733_v41 }
  0x28   :  { %656 = vmatpush3.bf16.msra.mxu0 %v726_v34  ;;  %675 = vmatprep.subr.bf16.mxu1 %v742_v32 }
  0x29   :  { %657 = vmatprep.subr.bf16.mxu0 %v742_v32 }
  0x2b   :  { %676 = vmatpush3.bf16.msra.mxu1 %v734_v42 }
  0x2c   :  { %658 = vmatpush3.bf16.msra.mxu0 %v727_v35  ;;  %677 = vmatprep.subr.bf16.mxu1 %v742_v32 }
  0x2d   :  { %659 = vmatprep.subr.bf16.mxu0 %v742_v32 }
  0x2f   :  { %678 = vmatpush3.bf16.msra.mxu1 %v735_v43 }
  0x30   :  { %660 = vmatpush3.bf16.msra.mxu0 %v728_v36  ;;  %679 = vmatprep.subr.bf16.mxu1 %v742_v32 }
  0x31   :  { %661 = vmatprep.subr.bf16.mxu0 %v742_v32 }
  0x33   :  { %680 = vmatpush3.bf16.msra.mxu1 %v736_v44 }
  0x34   :  { %662 = vmatpush3.bf16.msra.mxu0 %v729_v37  ;;  %681 = vmatprep.subr.bf16.mxu1 %v742_v32 }
  0x35   :  { %663 = vmatprep.subr.bf16.mxu0 %v742_v32 }
  0x37   :  { %682 = vmatpush3.bf16.msra.mxu1 %v737_v45 }
  0x38   :  { %664 = vmatpush3.bf16.msra.mxu0 %v730_v38  ;;  %683 = vmatprep.subr.bf16.mxu1 %v742_v32 }
  0x39   :  { %665 = vmatprep.subr.bf16.mxu0 %v742_v32 }
  0x3b   :  { %684 = vmatpush3.bf16.msra.mxu1 %v738_v46 }
  0x3c   :  { %666 = vmatpush3.bf16.msra.mxu0 %v731_v39  ;;  %685 = vmatprep.subr.bf16.mxu1 %v742_v32 }
  0x3d   :  { %667 = vmatprep.subr.bf16.mxu0 %v742_v32 }
  0x3f   :  { %686 = vmatpush3.bf16.msra.mxu1 %v739_v61 }
  0x40   :  { %668 = vmatpush3.bf16.msra.mxu0 %v732_v40  ;;  %687 = vmatprep.subr.bf16.mxu1 %v742_v32 }
  0x43   :  { %688 = vmatpush3.bf16.msra.mxu1 %v740_v62 }
  0xf6   :  { %v629_v47 = vpop.f32.mrb[0].mxu0 }
  0xf7   :  { %v630_v48 = vpop.f32.mrb[1].mxu0 }
  0xf8   :  { %v631_v50 = vadd.f32 %v630_v48, %v629_v47  ;;  %v632_v51 = vpop.f32.mrb[2].mxu0 }
  0xf9   :  { %v633_v52 = vpop.f32.mrb[3].mxu0  ;;  %v327_v53 = vpop.f32.mrb[0].mxu1 }
  0xfa   :  { %v288_v54 = vadd.f32 %v631_v50, %v564_v49  ;;  %v329_v55 = vpop.f32.mrb[1].mxu1 }
  0xfb   :  { %v330_v56 = vpop.f32.mrb[2].mxu1 }
  0xfc   :  { %v328_v57 = vadd.f32 %v327_v53, %v288_v54  ;;  %v331_v58 = vpop.f32.mrb[3].mxu1 }
  0xfe   :  { %v333_v59 = vmax.f32 %v328_v57, 0.0 }
 0x100   :  { %v334_v60 = vpack.c.bf16 %v333_v59, %v333_v59 }
 0x102   :  { %670 = vmatmul.mubr.bf16.vlgmr.msra.gmra.mrb[4].mxu0 %v334_v60 }
 0x1d5   :  { %v440_v0 = vpop.f32.mrb[4].mxu0 }
 0x1d6   :  { %v441_v1 = vadd.f32 %v595_v63, %v440_v0  ;;  %v671_v2 = vpop.f32.mrb[5].mxu0 }
 0x1d7   :  { %v443_v3 = vpop.f32.mrb[6].mxu0 }
 0x1d8   :  { %v446_v4 = vmax.f32 %v441_v1, 0.0  ;;  %v672_v5 = vpop.f32.mrb[7].mxu0 }
 0x1da   :  { %v447_v6 = vpack.c.bf16 %v446_v4, %v446_v4 }
 0x1dc   :  { %690 = vmatmul.mubr.bf16.vlgmr.msra.gmra.mrb[4].mxu1 %v447_v6 }
 0x2af   :  { %v553_v8 = vpop.f32.mrb[4].mxu1 }
 0x2b0   :  { %v554_v9 = vadd.f32 %v604_v7, %v553_v8  ;;  %v691_v10 = vpop.f32.mrb[5].mxu1 }
 0x2b1   :  { %v556_v11 = vpop.f32.mrb[6].mxu1 }
 0x2b2   :  { %559 = vst [vmem:[%s959_s7] sm:$0xff] %v554_v9  ;;  %v692_v12 = vpop.f32.mrb[7].mxu1 }

// kernel: net_forward.4
= control target key start
LH: loop header
LB: loop body
LE: loop exit
PB: predicated region body
PF: predicated region fallthrough
CT: control target
= control target key end

     0   :  { %s956_s12 = smov 0   ;;  %s958_s13 = smov 0   ;;  %s1095_s0 = inlined_call_operand.vmem [shape: bf16[4,64,256], index: 0, kind: input, shape index: {}]   ;;  %s1096_s1 = inlined_call_operand.vmem [shape: bf16[256,128], index: 1, kind: input, shape index: {}]   ;;  %s1097_s2 = inlined_call_operand.vmem [shape: f32[1,128], index: 2, kind: input, shape index: {}]   ;;  %s1098_s3 = inlined_call_operand.vmem [shape: bf16[64,128], index: 3, kind: output, shape index: {}]  }
   0x1   :  { %s960_s14 = smov 0  }
   0x2 LB: > { %s700_s15 = sadd.s32 4294967295, %s934_s14   ;;  %s973_s16 = sadd.s32 1, %s934_s14   ;;  %s934_s14 = sphi %s960_s14, %s1101_s14   ;;  %s930_s13 = sphi %s958_s13, %s1100_s13   ;;  %s926_s12 = sphi %s956_s12, %s1099_s12  }
   0x3   : > { %s17_s17 = ssub.s32 %s934_s14, %s973_s16  ;;  %s20_s18 = sadd.s32 1, %s930_s13 }
   0x4   : > { %p18_p0 = scmp.eq.s32.totalorder %s17_s17, 0  ;;  %p27_p1 = scmp.ne.s32.totalorder %s930_s13, %s926_s12 }
   0x5   : > { %p28_p2 = scmp.eq.s32.totalorder %s934_s14, 0  ;;  %p703_p4 = scmp.ge.s32.totalorder %s934_s14, 2 }
   0x6   : > { %s982_s19 = scalar_select %p18_p0, %s930_s13, %s20_s18  }
   0x7   : > { %p29_p3 = por %p28_p2, %p27_p1  ;;  %127 = sbr.rel (%p703_p4) target bundleno = 26 (0x1a), region = 24 }
   0xe   : > { %130 = sbr.rel (!%p29_p3) target bundleno = 26 (0x1a), region = 28  ;;  %s132_s20 = sand.u32 (%p29_p3), 1, %s930_s13  }
   0xf   : > { %s752_s21 = sshll.u32 (%p29_p3), %s934_s14, 5  ;;  %s704_s22 = sshll.u32 (%p29_p3), %s132_s20, 7 }
  0x10   : > { %s990_s25 = scalar_lea.vmem (%p29_p3), %s1095_s0, %s752_s21  ;;  %s134_s26 = scalar_lea.vmem (%p29_p3), [#allocation2], %s704_s22 }
  0x11   : > { %v196_v0 = vld [vmem:[%s990_s25] sm:$0xff] (%p29_p3)  ;;  %v198_v1 = vld [vmem:[%s990_s25 + $0x8] sm:$0xff] (%p29_p3)  ;;  %v200_v2 = vld [vmem:[%s990_s25 + $0x10] sm:$0xff] (%p29_p3) }
  0x12   : > { %197 = vst [vmem:[%s134_s26] sm:$0xff] (%p29_p3), %v196_v0  ;;  %199 = vst [vmem:[%s134_s26 + $0x8] sm:$0xff] (%p29_p3), %v198_v1  ;;  %v202_v3 = vld [vmem:[%s990_s25 + $0x18] sm:$0xff] (%p29_p3)  ;;  %v204_v4 = vld [vmem:[%s990_s25 + $0x40] sm:$0xff] (%p29_p3) }
  0x13   : > { %201 = vst [vmem:[%s134_s26 + $0x10] sm:$0xff] (%p29_p3), %v200_v2  ;;  %v206_v5 = vld [vmem:[%s990_s25 + $0x48] sm:$0xff] (%p29_p3)  ;;  %203 = vst [vmem:[%s134_s26 + $0x18] sm:$0xff] (%p29_p3), %v202_v3  ;;  %v208_v6 = vld [vmem:[%s990_s25 + $0x50] sm:$0xff] (%p29_p3) }
  0x14   : > { %205 = vst [vmem:[%s134_s26 + $0x20] sm:$0xff] (%p29_p3), %v204_v4  ;;  %207 = vst [vmem:[%s134_s26 + $0x28] sm:$0xff] (%p29_p3), %v206_v5  ;;  %v210_v7 = vld [vmem:[%s990_s25 + $0x58] sm:$0xff] (%p29_p3)  ;;  %v212_v8 = vld [vmem:[%s990_s25 + $0x80] sm:$0xff] (%p29_p3) }
  0x15   : > { %209 = vst [vmem:[%s134_s26 + $0x30] sm:$0xff] %v208_v6  ;;  %211 = vst [vmem:[%s134_s26 + $0x38] sm:$0xff] %v210_v7  ;;  %v214_v9 = vld [vmem:[%s990_s25 + $0x88] sm:$0xff]  ;;  %v216_v10 = vld [vmem:[%s990_s25 + $0x90] sm:$0xff] }
  0x16   : > { %213 = vst [vmem:[%s134_s26 + $0x40] sm:$0xff] %v212_v8  ;;  %v218_v11 = vld [vmem:[%s990_s25 + $0x98] sm:$0xff]  ;;  %215 = vst [vmem:[%s134_s26 + $0x48] sm:$0xff] %v214_v9  ;;  %v220_v12 = vld [vmem:[%s990_s25 + $0xc0] sm:$0xff] }
  0x17   : > { %217 = vst [vmem:[%s134_s26 + $0x50] sm:$0xff] %v216_v10  ;;  %219 = vst [vmem:[%s134_s26 + $0x58] sm:$0xff] %v218_v11  ;;  %v222_v13 = vld [vmem:[%s990_s25 + $0xc8] sm:$0xff]  ;;  %v224_v14 = vld [vmem:[%s990_s25 + $0xd0] sm:$0xff] }
  0x18   : > { %221 = vst [vmem:[%s134_s26 + $0x60] sm:$0xff] %v220_v12  ;;  %223 = vst [vmem:[%s134_s26 + $0x68] sm:$0xff] %v222_v13  ;;  %v226_v15 = vld [vmem:[%s990_s25 + $0xd8] sm:$0xff] }
  0x19   : > { %225 = vst [vmem:[%s134_s26 + $0x70] sm:$0xff] %v224_v14  ;;  %227 = vst [vmem:[%s134_s26 + $0x78] sm:$0xff] %v226_v15 }
  0x1a PF: > { %p708_p5 = scmp.ge.s32.totalorder %s934_s14, 1  ;;  %p232_p6 = scmp.lt.s32.totalorder %s934_s14, 3 }
  0x1c   : > { %p233_p7 = pnand %p708_p5, %p232_p6 }
  0x1d   : > { %v872_v16 = vld [vmem:[%s1096_s1 + $0x40] sm:$0xff] (!%p233_p7)   ;;  %v874_v18 = vld [vmem:[%s1096_s1 + $0x48] sm:$0xff] (!%p233_p7)   ;;  %v876_v20 = vld [vmem:[%s1096_s1 + $0x50] sm:$0xff] (!%p233_p7)   ;;  %s239_s20 = sand.u32 (!%p233_p7), 1, %s926_s12   ;;  %s710_s18 = sshll.u32 (!%p233_p7), %s700_s15, 2 }
  0x1e   : > { %236 = sbr.rel (%p233_p7) target bundleno = 315 (0x13b), region = 66  ;;  %v873_v17 = vld [vmem:[%s1096_s1] sm:$0xff] (!%p233_p7)   ;;  %768 = vmatprep.subr.bf16.mxu0 (!%p233_p7), %v872_v16  ;;  %832 = vmatprep.subr.bf16.mxu1 (!%p233_p7), %v872_v16  ;;  %v875_v19 = vld [vmem:[%s1096_s1 + $0x8] sm:$0xff] (!%p233_p7)   ;;  %v877_v21 = vld [vmem:[%s1096_s1 + $0x10] sm:$0xff] (!%p233_p7)   ;;  %s709_s23 = sshll.u32 (!%p233_p7), %s239_s20, 7 }
  0x1f   : > { %769 = vmatpush3.bf16.msra.mxu0 (!%p233_p7), %v873_v17  ;;  %840 = vmatpush3.bf16.msra.mxu1 (!%p233_p7), %v873_v17  ;;  %v878_v22 = vld [vmem:[%s1096_s1 + $0x58] sm:$0xff] (!%p233_p7)   ;;  %v880_v24 = vld [vmem:[%s1096_s1 + $0x60] sm:$0xff] (!%p233_p7)   ;;  %v882_v26 = vld [vmem:[%s1096_s1 + $0x68] sm:$0xff] (!%p233_p7)   ;;  %s1044_s29 = scalar_lea.vmem (!%p233_p7), [#allocation2], %s709_s23  ;;  %p264_p8 = scmp.lt.s32.totalorder (!%p233_p7), %s710_s18, 7 }
  0x20   : > { %770 = vmatprep.subr.bf16.mxu0 (!%p233_p7), %v874_v18  ;;  %833 = vmatprep.subr.bf16.mxu1 (!%p233_p7), %v874_v18  ;;  %v879_v23 = vld [vmem:[%s1096_s1 + $0x18] sm:$0xff] (!%p233_p7)   ;;  %v881_v25 = vld [vmem:[%s1096_s1 + $0x20] sm:$0xff] (!%p233_p7)   ;;  %v883_v29 = vld [vmem:[%s1096_s1 + $0x28] sm:$0xff] (!%p233_p7)  }
  0x21   : > { %v890_v27 = vld [vmem:[%s1044_s29 + $0x4] ss:$8 sps:$4 sm:$0xff] (!%p233_p7)   ;;  %v884_v30 = vld [vmem:[%s1096_s1 + $0x70] sm:$0xff] (!%p233_p7)   ;;  %v886_v32 = vld [vmem:[%s1096_s1 + $0x78] sm:$0xff] (!%p233_p7)  }
  0x22   : > { %v893_v28 = vld [vmem:[%s1044_s29 + $0x44] ss:$8 sps:$4 sm:$0xff] (!%p233_p7)   ;;  %526 = vmatprep.mubr.bf16.mxu0 (!%p233_p7), %v890_v27  ;;  %v885_v31 = vld [vmem:[%s1096_s1 + $0x30] sm:$0xff] (!%p233_p7)   ;;  %v887_v33 = vld [vmem:[%s1096_s1 + $0x38] sm:$0xff] (!%p233_p7)  }
  0x23   : > { %771 = vmatpush3.bf16.msra.mxu0 (!%p233_p7), %v875_v19  ;;  %841 = vmatpush3.bf16.msra.mxu1 (!%p233_p7), %v875_v19  ;;  %v888_v34 = vld [vmem:[%s1044_s29] ss:$8 sps:$4 sm:$0xff] (!%p233_p7)   ;;  %v894_v36 = vld [vmem:[%s1044_s29 + $0x14] ss:$8 sps:$4 sm:$0xff] (!%p233_p7)   ;;  %v898_v38 = vld [vmem:[%s1044_s29 + $0x10] ss:$8 sps:$4 sm:$0xff] (!%p233_p7)  }
  0x24   : > { %772 = vmatprep.subr.bf16.mxu0 (!%p233_p7), %v876_v20  ;;  %834 = vmatprep.subr.bf16.mxu1 (!%p233_p7), %v876_v20  ;;  %v891_v35 = vld [vmem:[%s1044_s29 + $0x40] ss:$8 sps:$4 sm:$0xff] (!%p233_p7)   ;;  %v896_v37 = vld [vmem:[%s1044_s29 + $0x54] ss:$8 sps:$4 sm:$0xff] (!%p233_p7)   ;;  %v899_v39 = vld [vmem:[%s1044_s29 + $0x50] ss:$8 sps:$4 sm:$0xff] (!%p233_p7)  }
  0x25   : > { %558 = vmatprep.mubr.bf16.mxu1 %v893_v28  ;;  %v900_v40 = vld [vmem:[%s1044_s29 + $0x24] ss:$8 sps:$4 sm:$0xff]   ;;  %v904_v42 = vld [vmem:[%s1044_s29 + $0x20] ss:$8 sps:$4 sm:$0xff]   ;;  %v906_v44 = vld [vmem:[%s1044_s29 + $0x34] ss:$8 sps:$4 sm:$0xff]  }
  0x26   : > { %v902_v41 = vld [vmem:[%s1044_s29 + $0x64] ss:$8 sps:$4 sm:$0xff]   ;;  %v905_v43 = vld [vmem:[%s1044_s29 + $0x60] ss:$8 sps:$4 sm:$0xff]   ;;  %v908_v45 = vld [vmem:[%s1044_s29 + $0x74] ss:$8 sps:$4 sm:$0xff]  }
  0x27   : > { %773 = vmatpush3.bf16.msra.mxu0 %v877_v21  ;;  %842 = vmatpush3.bf16.msra.mxu1 %v877_v21  ;;  %v910_v46 = vld [vmem:[%s1044_s29 + $0x30] ss:$8 sps:$4 sm:$0xff]   ;;  %s1103_s18 = smov (!%p264_p8, %s710_s18), 7 }
  0x28   : > { %774 = vmatprep.subr.bf16.mxu0 %v878_v22  ;;  %835 = vmatprep.subr.bf16.mxu1 %v878_v22  ;;  %v911_v47 = vld [vmem:[%s1044_s29 + $0x70] ss:$8 sps:$4 sm:$0xff]   ;;  %v744_v22 = vld [vmem:[%s1097_s2] ss:$0 sm:$0xff]  ;;  %s711_s14 = sshll.u32 %s1103_s18, 2 }
  0x29   : > { %s267_s23 = scalar_lea.vmem %s1098_s3, %s711_s14 }
  0x2b   : > { %775 = vmatpush3.bf16.msra.mxu0 %v879_v23  ;;  %843 = vmatpush3.bf16.msra.mxu1 %v879_v23 }
  0x2c   : > { %776 = vmatprep.subr.bf16.mxu0 %v880_v24  ;;  %836 = vmatprep.subr.bf16.mxu1 %v880_v24 }
  0x2f   : > { %777 = vmatpush3.bf16.msra.mxu0 %v881_v25  ;;  %844 = vmatpush3.bf16.msra.mxu1 %v881_v25 }
  0x30   : > { %778 = vmatprep.subr.bf16.mxu0 %v882_v26  ;;  %837 = vmatprep.subr.bf16.mxu1 %v882_v26 }
  0x33   : > { %779 = vmatpush3.bf16.msra.mxu0 %v883_v29  ;;  %845 = vmatpush3.bf16.msra.mxu1 %v883_v29 }
  0x34   : > { %780 = vmatprep.subr.bf16.mxu0 %v884_v30  ;;  %838 = vmatprep.subr.bf16.mxu1 %v884_v30 }
  0x37   : > { %781 = vmatpush3.bf16.msra.mxu0 %v885_v31  ;;  %846 = vmatpush3.bf16.msra.mxu1 %v885_v31 }
  0x38   : > { %782 = vmatprep.subr.bf16.mxu0 %v886_v32  ;;  %839 = vmatprep.subr.bf16.mxu1 %v886_v32 }
  0x3b   : > { %783 = vmatpush3.bf16.msra.mxu0 %v887_v33  ;;  %847 = vmatpush3.bf16.msra.mxu1 %v887_v33 }
  0x3e   : > { %527 = vmatmul.mubr.bf16.vlgmr.msra.gmra.mrb[0].mxu0 %v888_v34  ;;  %559 = vmatmul.mubr.bf16.vlgmr.msra.gmra.mrb[0].mxu1 %v891_v35 }
  0x3f   : > { %534 = vmatprep.mubr.bf16.mxu0 %v894_v36  ;;  %566 = vmatprep.mubr.bf16.mxu1 %v896_v37 }
  0x46   : > { %535 = vmatmul.mubr.bf16.gmra.mrb[4].mxu0 %v898_v38  ;;  %567 = vmatmul.mubr.bf16.gmra.mrb[4].mxu1 %v899_v39 }
  0x47   : > { %542 = vmatprep.mubr.bf16.mxu0 %v900_v40  ;;  %574 = vmatprep.mubr.bf16.mxu1 %v902_v41 }
  0x4e   : > { %543 = vmatmul.mubr.bf16.gmra.mrb[8].mxu0 %v904_v42  ;;  %575 = vmatmul.mubr.bf16.gmra.mrb[8].mxu1 %v905_v43 }
  0x4f   : > { %550 = vmatprep.mubr.bf16.mxu0 %v906_v44  ;;  %582 = vmatprep.mubr.bf16.mxu1 %v908_v45 }
  0x56   : > { %551 = vmatmul.mubr.bf16.gmra.mrb[12].mxu0 %v910_v46  ;;  %583 = vmatmul.mubr.bf16.gmra.mrb[12].mxu1 %v911_v47 }
 0x111   : > { %v784_v48 = vpop.f32.mrb[0].mxu0  ;;  %v808_v49 = vpop.f32.mrb[0].mxu1 }
 0x112   : > { %v785_v50 = vpop.f32.mrb[1].mxu0  ;;  %v809_v51 = vpop.f32.mrb[1].mxu1 }
 0x113   : > { %v786_v52 = vadd.f32 %v785_v50, %v784_v48  ;;  %v810_v53 = vadd.f32 %v809_v51, %v808_v49  ;;  %v787_v54 = vpop.f32.mrb[2].mxu0  ;;  %v811_v55 = vpop.f32.mrb[2].mxu1 }
 0x114   : > { %v788_v56 = vpop.f32.mrb[3].mxu0  ;;  %v812_v57 = vpop.f32.mrb[3].mxu1 }
 0x115   : > { %v789_v58 = vadd.f32 %v788_v56, %v787_v54  ;;  %v813_v59 = vadd.f32 %v812_v57, %v811_v55 }
 0x119   : > { %v790_v60 = vpop.f32.mrb[4].mxu0  ;;  %v814_v61 = vpop.f32.mrb[4].mxu1 }
 0x11a   : > { %v791_v62 = vpop.f32.mrb[5].mxu0  ;;  %v815_v63 = vpop.f32.mrb[5].mxu1 }
 0x11b   : > { %v792_v0 = vadd.f32 %v791_v62, %v790_v60  ;;  %v816_v1 = vadd.f32 %v815_v63, %v814_v61  ;;  %v793_v2 = vpop.f32.mrb[6].mxu0  ;;  %v817_v3 = vpop.f32.mrb[6].mxu1 }
 0x11c   : > { %v794_v4 = vpop.f32.mrb[7].mxu0  ;;  %v818_v5 = vpop.f32.mrb[7].mxu1 }
 0x11d   : > { %v795_v6 = vadd.f32 %v794_v4, %v793_v2  ;;  %v819_v7 = vadd.f32 %v818_v5, %v817_v3 }
 0x121   : > { %v796_v8 = vpop.f32.mrb[8].mxu0  ;;  %v820_v9 = vpop.f32.mrb[8].mxu1 }
 0x122   : > { %v797_v10 = vpop.f32.mrb[9].mxu0  ;;  %v821_v11 = vpop.f32.mrb[9].mxu1 }
 0x123   : > { %v798_v12 = vadd.f32 %v797_v10, %v796_v8  ;;  %v822_v13 = vadd.f32 %v821_v11, %v820_v9  ;;  %v799_v14 = vpop.f32.mrb[10].mxu0  ;;  %v823_v15 = vpop.f32.mrb[10].mxu1 }
 0x124   : > { %v800_v16 = vpop.f32.mrb[11].mxu0  ;;  %v824_v17 = vpop.f32.mrb[11].mxu1 }
 0x125   : > { %v591_v18 = vmax.f32 %v786_v52, %v798_v12  ;;  %v595_v19 = vmax.f32 %v810_v53, %v822_v13  ;;  %v801_v20 = vadd.f32 %v800_v16, %v799_v14  ;;  %v825_v21 = vadd.f32 %v824_v17, %v823_v15 }
 0x127   : > { %v599_v23 = vmax.f32 %v591_v18, %v595_v19  ;;  %v592_v24 = vmax.f32 %v789_v58, %v801_v20  ;;  %v596_v25 = vmax.f32 %v813_v59, %v825_v21 }
 0x129   : > { %v610_v26 = vadd.f32 %v744_v22, %v599_v23  ;;  %v600_v27 = vmax.f32 %v592_v24, %v596_v25  ;;  %v802_v28 = vpop.f32.mrb[12].mxu0  ;;  %v826_v29 = vpop.f32.mrb[12].mxu1 }
 0x12a   : > { %v803_v30 = vpop.f32.mrb[13].mxu0  ;;  %v827_v31 = vpop.f32.mrb[13].mxu1 }
 0x12b   : > { %v611_v32 = vadd.f32 %v744_v22, %v600_v27  ;;  %v804_v33 = vadd.f32 %v803_v30, %v802_v28  ;;  %v828_v34 = vadd.f32 %v827_v31, %v826_v29  ;;  %v805_v35 = vpop.f32.mrb[14].mxu0  ;;  %v829_v36 = vpop.f32.mrb[14].mxu1  ;;  %v614_v37 = vmax.f32 %v610_v26, 0.0 }
 0x12c   : > { %v806_v38 = vpop.f32.mrb[15].mxu0  ;;  %v830_v39 = vpop.f32.mrb[15].mxu1 }
 0x12d   : > { %v615_v40 = vmax.f32 %v611_v32, 0.0  ;;  %v593_v41 = vmax.f32 %v792_v0, %v804_v33  ;;  %v597_v42 = vmax.f32 %v816_v1, %v828_v34  ;;  %v807_v43 = vadd.f32 %v806_v38, %v805_v35 }
 0x12e   : > { %v831_v44 = vadd.f32 %v830_v39, %v829_v36 }
 0x12f   : > { %v760_v45 = vpack.c.bf16 %v615_v40, %v614_v37  ;;  %v601_v46 = vmax.f32 %v593_v41, %v597_v42  ;;  %v594_v47 = vmax.f32 %v795_v6, %v807_v43 }
 0x130   : > { %v598_v48 = vmax.f32 %v819_v7, %v831_v44 }
 0x131   : > { %761 = vst [vmem:[%s267_s23] sm:$0xff] %v760_v45   ;;  %v612_v49 = vadd.f32 %v744_v22, %v601_v46 }
 0x132   : > { %v602_v50 = vmax.f32 %v594_v47, %v598_v48 }
 0x133   : > { %v616_v52 = vmax.f32 %v612_v49, 0.0 }
 0x134   : > { %v613_v51 = vadd.f32 %v744_v22, %v602_v50 }
 0x136   : > { %v617_v53 = vmax.f32 %v613_v51, 0.0 }
 0x138   : > { %v765_v54 = vpack.c.bf16 %v617_v53, %v616_v52 }
 0x13a   : > { %767 = vst [vmem:[%s267_s23 + $0x8] sm:$0xff] %v765_v54  }
 0x13b PF: > { %p10_p9 = scmp.ge.s32.totalorder %s973_s16, 4   ;;  %s1099_s12 = smov %s930_s13 }
 0x13c   : > { %s1100_s13 = smov %s982_s19  ;;  %s1101_s14 = smov %s973_s16 }
 0x13d   :  { %12 = sbr.rel (!%p10_p9) target bundleno = 2 (0x2), region = 105 }

</bundles_post_ra>
